<compile_context>
chip_gen: v7x
topology: tpu7x:2x2x1
jax: 0.10.0
libtpu: 0.0.40
codegen_flags: <defaults>
</compile_context>

<pallas_src>
import functools

import jax
import jax.numpy as jnp
from jax import lax
from jax.experimental import pallas as pl
from jax.experimental.pallas import tpu as pltpu

N_CG_ITERS = 6     # matches `while i < 6` in the PyTorch module
_EPS = 1e-30       # Python float -> weak-typed literal, NOT a captured constant


def _round_up(x, m):
    return ((x + m - 1) // m) * m


# ---------------------------------------------------------------------------
# Shared CG solver (per-batch chains carried side by side).
# Used verbatim by the Pallas kernels and by the matched-precision JAX mirror.
# ---------------------------------------------------------------------------
def _cg_solve(rhs_re, rhs_im, ehe, *, unroll):
    """rhs_*: (B, N) f32.  ehe maps (p_re, p_im) -> (Ap_re, Ap_im), incl. +mu*p."""
    x_re = jnp.zeros_like(rhs_re)
    x_im = jnp.zeros_like(rhs_im)
    r_re, r_im = rhs_re, rhs_im
    p_re, p_im = rhs_re, rhs_im
    rsold = jnp.sum(r_re * r_re + r_im * r_im, axis=-1, keepdims=True)   # (B, 1)

    # alpha/beta are purely real (denominator = Re(p^H A p)), exactly like the
    # PyTorch module which builds them via torch.complex(Re, 0).
    def body(_, st):
        x_re, x_im, r_re, r_im, p_re, p_im, rsold = st
        ap_re, ap_im = ehe(p_re, p_im)
        denom = jnp.sum(p_re * ap_re + p_im * ap_im, axis=-1, keepdims=True)
        alpha = rsold / (denom + _EPS)
        x_re = x_re + alpha * p_re
        x_im = x_im + alpha * p_im
        r_re = r_re - alpha * ap_re
        r_im = r_im - alpha * ap_im
        rsnew = jnp.sum(r_re * r_re + r_im * r_im, axis=-1, keepdims=True)
        beta = rsnew / (rsold + _EPS)
        p_re = r_re + beta * p_re
        p_im = r_im + beta * p_im
        return (x_re, x_im, r_re, r_im, p_re, p_im, rsnew)

    st = (x_re, x_im, r_re, r_im, p_re, p_im, rsold)
    st = lax.fori_loop(0, N_CG_ITERS, body, st, unroll=unroll)
    return st[0], st[1]


# ---------------------------------------------------------------------------
# EhE operators (batched, packed complex matmuls).
# ---------------------------------------------------------------------------
def _ehe_explicit(p_re, p_im, s_re, s_im, f_fwd, f_adjw, mu_re, mu_im):
    """(E^h mask dcomp E + mu I) p with explicit packed NUDFT matrices.

    p_*: (B, N); s_*: (C, N); f_fwd: (N, 2M) = [F_re | F_im];
    f_adjw: (M, 2N) = diag(w) [F_re^T | -F_im^T] (w folded in).
    """
    B, N = p_re.shape
    C = s_re.shape[0]
    M = f_fwd.shape[1] // 2
    BC = B * C
    cd = f_fwd.dtype

    # per-coil sensitivity weighting (VPU, f32), flattened to (B*C, N)
    ci_re = (s_re[None] * p_re[:, None] - s_im[None] * p_im[:, None]).reshape(BC, N)
    ci_im = (s_re[None] * p_im[:, None] + s_im[None] * p_re[:, None]).reshape(BC, N)
    # forward NUDFT: one packed matmul (2BC, N) @ (N, 2M)
    ci = jnp.concatenate([ci_re, ci_im], axis=0).astype(cd)
    ks = jnp.dot(ci, f_fwd, preferred_element_type=jnp.float32)        # (2BC, 2M)
    ks_re = ks[:BC, :M] - ks[BC:, M:]
    ks_im = ks[:BC, M:] + ks[BC:, :M]
    # adjoint NUDFT (mask * dcomp already folded into f_adjw rows)
    wk = jnp.concatenate([ks_re, ks_im], axis=0).astype(cd)            # (2BC, M)
    ia = jnp.dot(wk, f_adjw, preferred_element_type=jnp.float32)       # (2BC, 2N)
    ia_re = (ia[:BC, :N] - ia[BC:, N:]).reshape(B, C, N)
    ia_im = (ia[:BC, N:] + ia[BC:, :N]).reshape(B, C, N)
    # conj(sens) coil combine
    o_re = jnp.sum(s_re[None] * ia_re + s_im[None] * ia_im, axis=1)    # (B, N)
    o_im = jnp.sum(s_re[None] * ia_im - s_im[None] * ia_re, axis=1)
    # + mu * p (mu is complex64 in the reference code)
    o_re = o_re + mu_re * p_re - mu_im * p_im
    o_im = o_im + mu_re * p_im + mu_im * p_re
    return o_re, o_im


def _ehe_gram(p_re, p_im, gt, mu_re, mu_im):
    """(G + mu I) p with the packed transpose-Gram operator gt = [Gt_re | Gt_im]."""
    B, N = p_re.shape
    cd = gt.dtype
    lhs = jnp.concatenate([p_re, p_im], axis=0).astype(cd)             # (2B, N)
    r = jnp.dot(lhs, gt, preferred_element_type=jnp.float32)           # (2B, 2N)
    q_re = r[:B, :N] - r[B:, N:]
    q_im = r[:B, N:] + r[B:, :N]
    o_re = q_re + mu_re * p_re - mu_im * p_im
    o_im = q_im + mu_re * p_im + mu_im * p_re
    return o_re, o_im


# ---------------------------------------------------------------------------
# Pallas kernels: whole batched CG solve in a single invocation (no grid), so
# all operands are single-buffered VMEM residents.
# ---------------------------------------------------------------------------
def _cg_dc_explicit_kernel(mu_ref,                      # SMEM (2,) [Re(mu), Im(mu)]
                           rhs_re_ref, rhs_im_ref,      # (B, N)
                           s_re_ref, s_im_ref,          # (C, N)
                           f_fwd_ref,                   # (N, 2M)
                           f_adjw_ref,                  # (M, 2N) (w folded)
                           x_re_ref, x_im_ref,          # outputs (B, N)
                           *, unroll):
    mu_re = mu_ref[0]
    mu_im = mu_ref[1]

    def ehe(p_re, p_im):
        return _ehe_explicit(p_re, p_im, s_re_ref[...], s_im_ref[...],
                             f_fwd_ref[...], f_adjw_ref[...], mu_re, mu_im)

    x_re, x_im = _cg_solve(rhs_re_ref[...], rhs_im_ref[...], ehe, unroll=unroll)
    x_re_ref[...] = x_re
    x_im_ref[...] = x_im


def _cg_dc_gram_kernel(mu_ref,                          # SMEM (2,)
                       rhs_re_ref, rhs_im_ref,          # (B, N)
                       gt_ref,                          # (N, 2N)
                       x_re_ref, x_im_ref,              # outputs (B, N)
                       *, unroll):
    mu_re = mu_ref[0]
    mu_im = mu_ref[1]

    def ehe(p_re, p_im):
        return _ehe_gram(p_re, p_im, gt_ref[...], mu_re, mu_im)

    x_re, x_im = _cg_solve(rhs_re_ref[...], rhs_im_ref[...], ehe, unroll=unroll)
    x_re_ref[...] = x_re
    x_im_ref[...] = x_im


# ---------------------------------------------------------------------------
# Precompute (hoisted out of the per-call path; cache per trajectory/sens/mask).
# ---------------------------------------------------------------------------
def _nudft_real_planes(ktraj, im_shape):
    """F[n, m] = exp(-i (ky[m]*y_n + kx[m]*x_n)) / sqrt(M) as (re, im) f32 planes."""
    H, W = im_shape
    yy, xx = jnp.meshgrid(jnp.arange(H, dtype=jnp.float32),
                          jnp.arange(W, dtype=jnp.float32), indexing="ij")
    y = yy.reshape(-1, 1)
    x = xx.reshape(-1, 1)
    phase = y * ktraj[0][None, :] + x * ktraj[1][None, :]               # (N, M)
    scale = 1.0 / jnp.sqrt(jnp.float32(ktraj.shape[1]))
    return jnp.cos(phase) * scale, -jnp.sin(phase) * scale


def precompute_packed_nudft(ktraj, im_shape, w, compute_dtype=jnp.bfloat16):
    """Packed forward / w-folded adjoint NUDFT matrices for the explicit kernel.

    Returns (f_fwd (N, 2Mp), f_adjw (Mp, 2N)); M is padded to a multiple of 128
    with zero-weight samples so packed splits stay on lane-tile boundaries.
    """
    f_re, f_im = _nudft_real_planes(ktraj, im_shape)
    M = f_re.shape[1]
    Mp = max(_round_up(M, 128), 128)
    w = jnp.asarray(w, jnp.float32).reshape(M)
    if Mp != M:
        pad = Mp - M
        f_re = jnp.pad(f_re, ((0, 0), (0, pad)))
        f_im = jnp.pad(f_im, ((0, 0), (0, pad)))
        w = jnp.pad(w, (0, pad))
    f_fwd = jnp.concatenate([f_re, f_im], axis=1).astype(compute_dtype)
    # F^h = conj(F)^T  ->  [F_re^T | -F_im^T]; fold w = mask*dcomp into the rows.
    f_adjw = (w[:, None] * jnp.concatenate([f_re.T, -f_im.T], axis=1)
              ).astype(compute_dtype)
    return f_fwd, f_adjw


def precompute_packed_gram(ktraj, sens_maps, w, compute_dtype=jnp.bfloat16):
    """Packed transpose-Gram operator Gt (N, 2N) = [Gt_re | Gt_im] with
    Gt[n, n'] = (sum_c s_c[n] conj(s_c[n'])) * (sum_m F[n,m] w[m] conj(F[n',m])),
    so EhE(p) = p_row @ Gt (+ mu*p).  One matmul per CG iteration, footprint
    independent of C and M."""
    C = sens_maps.shape[0]
    H, W = sens_maps.shape[1:]
    N = H * W
    hi = lax.Precision.HIGHEST
    f_re, f_im = _nudft_real_planes(ktraj, (H, W))
    f = (f_re + 1j * f_im).astype(jnp.complex64)                        # (N, M)
    w = jnp.asarray(w, jnp.float32).reshape(1, -1)
    a = jnp.matmul(f * w, jnp.conj(f).T, precision=hi)                  # (N, N)
    s = sens_maps.reshape(C, N).astype(jnp.complex64)
    smat = jnp.matmul(s.T, jnp.conj(s), precision=hi)                   # (N, N)
    gt = smat * a
    return jnp.concatenate([jnp.real(gt), jnp.imag(gt)], axis=1).astype(compute_dtype)


# ---------------------------------------------------------------------------
# VMEM budget: per-generation capacity instead of a hard 64 MiB clamp.
# ---------------------------------------------------------------------------
def _vmem_limit_bytes(wanted_bytes):
    try:
        cap = int(pltpu.get_tpu_info().vmem_capacity_bytes)
    except Exception:
        cap = 128 << 20      # interpret / query failure: limit is advisory there
    budget = int(0.85 * cap)
    return max(32 << 20, min(budget, int(wanted_bytes) + (16 << 20)))


# ---------------------------------------------------------------------------
# Wrapper: Pallas equivalent of dc_block.forward.
# ---------------------------------------------------------------------------
def dc_block_pallas(rhs, sens_maps, ktraj, dcomp, mask, mu, op=None, op_adj=None, *,
                    nudft=None, gram=None, compute_dtype=jnp.bfloat16,
                    unroll_cg=None):
    """rhs: (H, W) or (B, H, W) complex image(s); sens_maps: (C, H, W) complex.

    `op`/`op_adj` from the PyTorch signature are superseded by the explicit
    NUDFT (`nudft=`) or precomputed Gram operator (`gram=`).
    """
    if not jnp.iscomplexobj(rhs):
        # TODO(synk): mirror real2complex (2-channel real -> complex) if needed.
        rhs = rhs.astype(jnp.complex64)
    batched = rhs.ndim == 3
    if not batched:
        rhs = rhs[None]
    B, H, W = rhs.shape
    C = sens_maps.shape[0]
    N = H * W

    w = (jnp.asarray(mask, jnp.float32) * jnp.asarray(dcomp, jnp.float32)).reshape(-1)

    use_gram = gram is not None
    if not use_gram and nudft is None:
        # One-off call: the packed NUDFT pair is cheapest to build.  For repeated
        # DC blocks with the same (ktraj, sens, mask, dcomp) precompute the Gram
        # operator once (precompute_packed_gram) and pass it via `gram=`.
        nudft = precompute_packed_nudft(ktraj, (H, W), w, compute_dtype)

    rhs_f = rhs.reshape(B, N)
    rhs_re = jnp.real(rhs_f).astype(jnp.float32)
    rhs_im = jnp.imag(rhs_f).astype(jnp.float32)
    mu_c = jnp.asarray(mu, jnp.complex64)
    mu_arr = jnp.stack([jnp.real(mu_c), jnp.imag(mu_c)]).astype(jnp.float32)

    smem_spec = pl.BlockSpec(memory_space=pltpu.MemorySpace.SMEM)
    vmem_spec = pl.BlockSpec(memory_space=pltpu.MemorySpace.VMEM)
    out_shape = (jax.ShapeDtypeStruct((B, N), jnp.float32),
                 jax.ShapeDtypeStruct((B, N), jnp.float32))
    cb = jnp.dtype(compute_dtype).itemsize

    if use_gram:
        gt = jnp.asarray(gram, compute_dtype)
        resident = gt.size * cb + 4 * B * N * 4
        iter_bytes = 2 * B * N * cb + 4 * B * N * 4 + 8 * B * N * 4
        operands = (mu_arr, rhs_re, rhs_im, gt)
        in_specs = [smem_spec, vmem_spec, vmem_spec, vmem_spec]
        kernel = _cg_dc_gram_kernel
    else:
        f_fwd, f_adjw = nudft
        f_fwd = jnp.asarray(f_fwd, compute_dtype)
        f_adjw = jnp.asarray(f_adjw, compute_dtype)
        Mp = f_fwd.shape[1] // 2
        # Pad coils so 2*Cp*B rows pack cleanly onto (16, 128) bf16 tiles.
        Cp = max(_round_up(C, 8), 8)
        s = sens_maps.reshape(C, N)
        if Cp != C:
            s = jnp.pad(s, ((0, Cp - C), (0, 0)))
        s_re = jnp.real(s).astype(jnp.float32)
        s_im = jnp.imag(s).astype(jnp.float32)
        resident = (f_fwd.size + f_adjw.size) * cb + 2 * Cp * N * 4 + 4 * B * N * 4
        iter_bytes = (2 * B * Cp * (N + Mp) * cb
                      + 2 * B * Cp * (2 * Mp + 2 * N) * 4
                      + 6 * B * Cp * N * 4)
        operands = (mu_arr, rhs_re, rhs_im, s_re, s_im, f_fwd, f_adjw)
        in_specs = [smem_spec] + [vmem_spec] * 6
        kernel = _cg_dc_explicit_kernel

    if unroll_cg is None:
        # A static unroll keeps every iteration's intermediates live; fall back to
        # lax.fori_loop once that working set gets large (VMEM pressure / spills).
        unroll_cg = (N_CG_ITERS * iter_bytes) < (8 << 20)

    live = iter_bytes * (N_CG_ITERS if unroll_cg else 1)
    vmem_limit = _vmem_limit_bytes(resident + live)

    x_re, x_im = pl.pallas_call(
        functools.partial(kernel, unroll=bool(unroll_cg)),
        out_shape=out_shape,
        in_specs=in_specs,
        out_specs=(vmem_spec, vmem_spec),
        compiler_params=pltpu.CompilerParams(vmem_limit_bytes=vmem_limit),
    )(*operands)

    x = (x_re + 1j * x_im).reshape(B, H, W).astype(jnp.complex64)
    return x if batched else x[0]


# ---------------------------------------------------------------------------
# Pure-JAX references for validation.
# ---------------------------------------------------------------------------
def dc_block_ref(rhs, sens_maps, ktraj, dcomp, mask, mu):
    """Full-precision complex64 mirror of the PyTorch control flow (single image)."""
    H, W = rhs.shape
    C = sens_maps.shape[0]
    N = H * W
    f_re, f_im = _nudft_real_planes(ktraj, (H, W))
    f = (f_re + 1j * f_im).astype(jnp.complex64)
    fh = jnp.conj(f).T
    sens = sens_maps.reshape(C, N)
    w = (mask.astype(jnp.float32) * dcomp.astype(jnp.float32)).reshape(1, -1)
    mu_c = jnp.asarray(mu, jnp.complex64)
    hi = lax.Precision.HIGHEST

    def ehe(p):
        ci = sens * p[None, :]
        ks = jnp.matmul(ci, f, precision=hi)
        ia = jnp.matmul(ks * w, fh, precision=hi)
        return jnp.sum(jnp.conj(sens) * ia, axis=0) + mu_c * p

    x = jnp.zeros((N,), jnp.complex64)
    r = rhs.reshape(N)
    p = r
    rsold = jnp.sum(jnp.conj(r) * r).real
    for _ in range(N_CG_ITERS):
        Ap = ehe(p)
        alpha = (rsold / jnp.sum(jnp.conj(p) * Ap).real).astype(jnp.complex64)
        x = x + alpha * p
        r = r - alpha * Ap
        rsnew = jnp.sum(jnp.conj(r) * r).real
        beta = (rsnew / rsold).astype(jnp.complex64)
        p = r + beta * p
        rsold = rsnew
    return x.reshape(H, W)


def dc_block_matched_ref(rhs, sens_maps, mu, *, nudft=None, gram=None, unroll=True):
    """Plain-JAX mirror of the kernel's exact arithmetic (same packing, padding
    and low-precision casts) — tight check of the Pallas implementation itself."""
    batched = rhs.ndim == 3
    if not batched:
        rhs = rhs[None]
    B, H, W = rhs.shape
    N = H * W
    rhs_f = rhs.reshape(B, N)
    rhs_re = jnp.real(rhs_f).astype(jnp.float32)
    rhs_im = jnp.imag(rhs_f).astype(jnp.float32)
    mu_c = jnp.asarray(mu, jnp.complex64)
    mu_re = jnp.real(mu_c).astype(jnp.float32)
    mu_im = jnp.imag(mu_c).astype(jnp.float32)

    if gram is not None:
        ehe = lambda pr, pi: _ehe_gram(pr, pi, gram, mu_re, mu_im)
    else:
        f_fwd, f_adjw = nudft
        C = sens_maps.shape[0]
        Cp = max(_round_up(C, 8), 8)
        s = sens_maps.reshape(C, N)
        if Cp != C:
            s = jnp.pad(s, ((0, Cp - C), (0, 0)))
        s_re = jnp.real(s).astype(jnp.float32)
        s_im = jnp.imag(s).astype(jnp.float32)
        ehe = lambda pr, pi: _ehe_explicit(pr, pi, s_re, s_im, f_fwd, f_adjw,
                                           mu_re, mu_im)

    x_re, x_im = _cg_solve(rhs_re, rhs_im, ehe, unroll=unroll)
    x = (x_re + 1j * x_im).reshape(B, H, W).astype(jnp.complex64)
    return x if batched else x[0]


# ---------------------------------------------------------------------------
if __name__ == "__main__":
    key = jax.random.PRNGKey(0)
    B = 2               # batch (all chains folded into one kernel invocation)
    H = W = 16          # image 16x16 -> N = 256 (lane-aligned)
    C = 6               # coils (padded to 8 inside the explicit path)
    M = 200             # non-Cartesian samples (padded to 256 inside precompute)

    keys = jax.random.split(key, 8)
    rhs = (jax.random.normal(keys[0], (B, H, W), dtype=jnp.float32)
           + 1j * jax.random.normal(keys[1], (B, H, W), dtype=jnp.float32)
           ).astype(jnp.complex64)
    sens = (jax.random.normal(keys[2], (C, H, W), dtype=jnp.float32)
            + 1j * jax.random.normal(keys[3], (C, H, W), dtype=jnp.float32))
    # normalized coil maps (sum_c |s_c|^2 = 1), as in real MRI pipelines
    sens = (sens / jnp.sqrt(jnp.sum(jnp.abs(sens) ** 2, axis=0, keepdims=True) + 1e-6)
            ).astype(jnp.complex64)
    ktraj = jax.random.uniform(keys[4], (2, M), dtype=jnp.float32,
                               minval=-jnp.pi, maxval=jnp.pi)
    dcomp = jax.random.uniform(keys[5], (M,), dtype=jnp.float32, minval=0.5, maxval=1.5)
    mask = (jax.random.uniform(keys[6], (M,), dtype=jnp.float32) < 0.7).astype(jnp.float32)
    mu = jnp.complex64(0.5)

    w = mask * dcomp

    # Hoisted precomputes (cache per (ktraj, mask, dcomp[, sens]) in a real pipeline).
    nudft_bf16 = precompute_packed_nudft(ktraj, (H, W), w, jnp.bfloat16)
    nudft_f32 = precompute_packed_nudft(ktraj, (H, W), w, jnp.float32)
    gram_f32 = precompute_packed_gram(ktraj, sens, w, jnp.float32)

    # Pallas kernels: Gram path, explicit f32 path (lax.fori_loop CG), explicit bf16 path.
    x_gram_f32 = jax.block_until_ready(
        dc_block_pallas(rhs, sens, ktraj, dcomp, mask, mu,
                        gram=gram_f32, compute_dtype=jnp.float32))
    x_expl_f32 = jax.block_until_ready(
        dc_block_pallas(rhs, sens, ktraj, dcomp, mask, mu,
                        nudft=nudft_f32, compute_dtype=jnp.float32, unroll_cg=False))
    x_expl_bf16 = jax.block_until_ready(
        dc_block_pallas(rhs, sens, ktraj, dcomp, mask, mu,
                        nudft=nudft_bf16, compute_dtype=jnp.bfloat16))

    # References.
    x_ref = jnp.stack([dc_block_ref(rhs[b], sens, ktraj, dcomp, mask, mu)
                       for b in range(B)])
    x_match_bf16 = dc_block_matched_ref(rhs, sens, mu, nudft=nudft_bf16)

    def relerr(a, b):
        return float(jnp.max(jnp.abs(a - b)) / (jnp.max(jnp.abs(b)) + 1e-8))

    for name, val in (("gram_f32", x_gram_f32), ("expl_f32", x_expl_f32),
                      ("expl_bf16", x_expl_bf16)):
        assert jnp.all(jnp.isfinite(jnp.abs(val))), f"non-finite output from {name}"

    # (1) f32 Gram kernel vs. full-precision complex64 reference.
    e1 = relerr(x_gram_f32, x_ref)
    assert e1 < 5e-2, f"gram f32 kernel vs reference mismatch, rel err = {e1}"
    # (2) f32 explicit kernel (fori-loop CG) vs. full-precision reference.
    e2 = relerr(x_expl_f32, x_ref)
    assert e2 < 5e-2, f"explicit f32 kernel vs reference mismatch, rel err = {e2}"
    # (3) bf16 explicit kernel vs. matched-precision JAX mirror (same math & casts).
    e3 = relerr(x_expl_bf16, x_match_bf16)
    assert e3 < 5e-3, f"bf16 kernel vs matched reference mismatch, rel err = {e3}"
    # (4) bf16 explicit kernel vs. full-precision reference (loose sanity bound).
    e4 = relerr(x_expl_bf16, x_ref)
    assert e4 < 2e-1, f"bf16 kernel drifted from f32 reference, rel err = {e4}"

    print("KERNEL_OK")
</pallas_src>

<mosaic_0001>
module attributes {stable_mosaic.version = 11 : i64} {
  func.func @_cg_dc_gram_kernel(%arg0: memref<2xf32, #tpu.memory_space<smem>>, %arg1: memref<2x256xf32, #tpu.memory_space<vmem>>, %arg2: memref<2x256xf32, #tpu.memory_space<vmem>>, %arg3: memref<256x512xf32, #tpu.memory_space<vmem>>, %arg4: memref<2x256xf32, #tpu.memory_space<vmem>>, %arg5: memref<2x256xf32, #tpu.memory_space<vmem>>) attributes {dimension_semantics = [], scalar_prefetch = 0 : i64, scratch_operands = 0 : i64, tpu.core_type = #tpu.core_type<tc>} {
    %c0 = arith.constant 0 : index
    %0 = memref.load %arg0[%c0] : memref<2xf32, #tpu.memory_space<smem>>
    %c1 = arith.constant 1 : index
    %1 = memref.load %arg0[%c1] : memref<2xf32, #tpu.memory_space<smem>>
    %c0_0 = arith.constant 0 : index
    %c0_1 = arith.constant 0 : index
    %2 = vector.load %arg1[%c0_0, %c0_1] : memref<2x256xf32, #tpu.memory_space<vmem>>, vector<2x256xf32>
    %c0_2 = arith.constant 0 : index
    %c0_3 = arith.constant 0 : index
    %3 = vector.load %arg2[%c0_2, %c0_3] : memref<2x256xf32, #tpu.memory_space<vmem>>, vector<2x256xf32>
    %cst = arith.constant 0.000000e+00 : f32
    %4 = vector.broadcast %cst : f32 to vector<2x256xf32>
    %cst_4 = arith.constant 0.000000e+00 : f32
    %5 = vector.broadcast %cst_4 : f32 to vector<2x256xf32>
    %6 = arith.mulf %2, %2 : vector<2x256xf32>
    %7 = arith.mulf %3, %3 : vector<2x256xf32>
    %8 = arith.addf %6, %7 : vector<2x256xf32>
    %cst_5 = arith.constant dense<0.000000e+00> : vector<2xf32>
    %9 = vector.multi_reduction <add>, %8, %cst_5 [1] : vector<2x256xf32> to vector<2xf32>
    %10 = vector.shape_cast %9 : vector<2xf32> to vector<2x1xf32>
    %c0_i32 = arith.constant 0 : i32
    %c0_6 = arith.constant 0 : index
    %c0_7 = arith.constant 0 : index
    %11 = vector.load %arg3[%c0_6, %c0_7] : memref<256x512xf32, #tpu.memory_space<vmem>>, vector<256x512xf32>
    %12 = tpu.concatenate %2, %3 in 0 : vector<2x256xf32>, vector<2x256xf32> -> vector<4x256xf32>
    %cst_8 = arith.constant dense<0.000000e+00> : vector<4x512xf32>
    %13 = tpu.matmul %12, %11, %cst_8 {dimension_numbers = #tpu.dot_dimension_numbers<[1], [0], [0], [1], [0, 0, 1, 1], [], []>} : vector<4x256xf32>, vector<256x512xf32>, vector<4x512xf32> -> vector<4x512xf32>
    %14 = vector.extract_strided_slice %13 {offsets = [0, 0], sizes = [2, 256], strides = [1, 1]} : vector<4x512xf32> to vector<2x256xf32>
    %15 = vector.extract_strided_slice %13 {offsets = [2, 256], sizes = [2, 256], strides = [1, 1]} : vector<4x512xf32> to vector<2x256xf32>
    %16 = arith.subf %14, %15 : vector<2x256xf32>
    %17 = vector.extract_strided_slice %13 {offsets = [0, 256], sizes = [2, 256], strides = [1, 1]} : vector<4x512xf32> to vector<2x256xf32>
    %18 = vector.extract_strided_slice %13 {offsets = [2, 0], sizes = [2, 256], strides = [1, 1]} : vector<4x512xf32> to vector<2x256xf32>
    %19 = arith.addf %17, %18 : vector<2x256xf32>
    %20 = vector.broadcast %0 : f32 to vector<2x256xf32>
    %21 = arith.mulf %20, %2 : vector<2x256xf32>
    %22 = arith.addf %16, %21 : vector<2x256xf32>
    %23 = vector.broadcast %1 : f32 to vector<2x256xf32>
    %24 = arith.mulf %23, %3 : vector<2x256xf32>
    %25 = arith.subf %22, %24 : vector<2x256xf32>
    %26 = vector.broadcast %0 : f32 to vector<2x256xf32>
    %27 = arith.mulf %26, %3 : vector<2x256xf32>
    %28 = arith.addf %19, %27 : vector<2x256xf32>
    %29 = vector.broadcast %1 : f32 to vector<2x256xf32>
    %30 = arith.mulf %29, %2 : vector<2x256xf32>
    %31 = arith.addf %28, %30 : vector<2x256xf32>
    %32 = arith.mulf %2, %25 : vector<2x256xf32>
    %33 = arith.mulf %3, %31 : vector<2x256xf32>
    %34 = arith.addf %32, %33 : vector<2x256xf32>
    %cst_9 = arith.constant dense<0.000000e+00> : vector<2xf32>
    %35 = vector.multi_reduction <add>, %34, %cst_9 [1] : vector<2x256xf32> to vector<2xf32>
    %36 = vector.shape_cast %35 : vector<2xf32> to vector<2x1xf32>
    %cst_10 = arith.constant 1.000000e-30 : f32
    %37 = vector.broadcast %cst_10 : f32 to vector<2x1xf32>
    %38 = arith.addf %36, %37 : vector<2x1xf32>
    %39 = arith.divf %10, %38 : vector<2x1xf32>
    %40 = vector.broadcast %39 : vector<2x1xf32> to vector<2x256xf32>
    %41 = arith.mulf %40, %2 : vector<2x256xf32>
    %42 = arith.addf %4, %41 : vector<2x256xf32>
    %43 = vector.broadcast %39 : vector<2x1xf32> to vector<2x256xf32>
    %44 = arith.mulf %43, %3 : vector<2x256xf32>
    %45 = arith.addf %5, %44 : vector<2x256xf32>
    %46 = vector.broadcast %39 : vector<2x1xf32> to vector<2x256xf32>
    %47 = arith.mulf %46, %25 : vector<2x256xf32>
    %48 = arith.subf %2, %47 : vector<2x256xf32>
    %49 = vector.broadcast %39 : vector<2x1xf32> to vector<2x256xf32>
    %50 = arith.mulf %49, %31 : vector<2x256xf32>
    %51 = arith.subf %3, %50 : vector<2x256xf32>
    %52 = arith.mulf %48, %48 : vector<2x256xf32>
    %53 = arith.mulf %51, %51 : vector<2x256xf32>
    %54 = arith.addf %52, %53 : vector<2x256xf32>
    %cst_11 = arith.constant dense<0.000000e+00> : vector<2xf32>
    %55 = vector.multi_reduction <add>, %54, %cst_11 [1] : vector<2x256xf32> to vector<2xf32>
    %56 = vector.shape_cast %55 : vector<2xf32> to vector<2x1xf32>
    %cst_12 = arith.constant 1.000000e-30 : f32
    %57 = vector.broadcast %cst_12 : f32 to vector<2x1xf32>
    %58 = arith.addf %10, %57 : vector<2x1xf32>
    %59 = arith.divf %56, %58 : vector<2x1xf32>
    %60 = vector.broadcast %59 : vector<2x1xf32> to vector<2x256xf32>
    %61 = arith.mulf %60, %2 : vector<2x256xf32>
    %62 = arith.addf %48, %61 : vector<2x256xf32>
    %63 = vector.broadcast %59 : vector<2x1xf32> to vector<2x256xf32>
    %64 = arith.mulf %63, %3 : vector<2x256xf32>
    %65 = arith.addf %51, %64 : vector<2x256xf32>
    %c1_i32 = arith.constant 1 : i32
    %c0_13 = arith.constant 0 : index
    %c0_14 = arith.constant 0 : index
    %66 = vector.load %arg3[%c0_13, %c0_14] : memref<256x512xf32, #tpu.memory_space<vmem>>, vector<256x512xf32>
    %67 = tpu.concatenate %62, %65 in 0 : vector<2x256xf32>, vector<2x256xf32> -> vector<4x256xf32>
    %cst_15 = arith.constant dense<0.000000e+00> : vector<4x512xf32>
    %68 = tpu.matmul %67, %66, %cst_15 {dimension_numbers = #tpu.dot_dimension_numbers<[1], [0], [0], [1], [0, 0, 1, 1], [], []>} : vector<4x256xf32>, vector<256x512xf32>, vector<4x512xf32> -> vector<4x512xf32>
    %69 = vector.extract_strided_slice %68 {offsets = [0, 0], sizes = [2, 256], strides = [1, 1]} : vector<4x512xf32> to vector<2x256xf32>
    %70 = vector.extract_strided_slice %68 {offsets = [2, 256], sizes = [2, 256], strides = [1, 1]} : vector<4x512xf32> to vector<2x256xf32>
    %71 = arith.subf %69, %70 : vector<2x256xf32>
    %72 = vector.extract_strided_slice %68 {offsets = [0, 256], sizes = [2, 256], strides = [1, 1]} : vector<4x512xf32> to vector<2x256xf32>
    %73 = vector.extract_strided_slice %68 {offsets = [2, 0], sizes = [2, 256], strides = [1, 1]} : vector<4x512xf32> to vector<2x256xf32>
    %74 = arith.addf %72, %73 : vector<2x256xf32>
    %75 = vector.broadcast %0 : f32 to vector<2x256xf32>
    %76 = arith.mulf %75, %62 : vector<2x256xf32>
    %77 = arith.addf %71, %76 : vector<2x256xf32>
    %78 = vector.broadcast %1 : f32 to vector<2x256xf32>
    %79 = arith.mulf %78, %65 : vector<2x256xf32>
    %80 = arith.subf %77, %79 : vector<2x256xf32>
    %81 = vector.broadcast %0 : f32 to vector<2x256xf32>
    %82 = arith.mulf %81, %65 : vector<2x256xf32>
    %83 = arith.addf %74, %82 : vector<2x256xf32>
    %84 = vector.broadcast %1 : f32 to vector<2x256xf32>
    %85 = arith.mulf %84, %62 : vector<2x256xf32>
    %86 = arith.addf %83, %85 : vector<2x256xf32>
    %87 = arith.mulf %62, %80 : vector<2x256xf32>
    %88 = arith.mulf %65, %86 : vector<2x256xf32>
    %89 = arith.addf %87, %88 : vector<2x256xf32>
    %cst_16 = arith.constant dense<0.000000e+00> : vector<2xf32>
    %90 = vector.multi_reduction <add>, %89, %cst_16 [1] : vector<2x256xf32> to vector<2xf32>
    %91 = vector.shape_cast %90 : vector<2xf32> to vector<2x1xf32>
    %cst_17 = arith.constant 1.000000e-30 : f32
    %92 = vector.broadcast %cst_17 : f32 to vector<2x1xf32>
    %93 = arith.addf %91, %92 : vector<2x1xf32>
    %94 = arith.divf %56, %93 : vector<2x1xf32>
    %95 = vector.broadcast %94 : vector<2x1xf32> to vector<2x256xf32>
    %96 = arith.mulf %95, %62 : vector<2x256xf32>
    %97 = arith.addf %42, %96 : vector<2x256xf32>
    %98 = vector.broadcast %94 : vector<2x1xf32> to vector<2x256xf32>
    %99 = arith.mulf %98, %65 : vector<2x256xf32>
    %100 = arith.addf %45, %99 : vector<2x256xf32>
    %101 = vector.broadcast %94 : vector<2x1xf32> to vector<2x256xf32>
    %102 = arith.mulf %101, %80 : vector<2x256xf32>
    %103 = arith.subf %48, %102 : vector<2x256xf32>
    %104 = vector.broadcast %94 : vector<2x1xf32> to vector<2x256xf32>
    %105 = arith.mulf %104, %86 : vector<2x256xf32>
    %106 = arith.subf %51, %105 : vector<2x256xf32>
    %107 = arith.mulf %103, %103 : vector<2x256xf32>
    %108 = arith.mulf %106, %106 : vector<2x256xf32>
    %109 = arith.addf %107, %108 : vector<2x256xf32>
    %cst_18 = arith.constant dense<0.000000e+00> : vector<2xf32>
    %110 = vector.multi_reduction <add>, %109, %cst_18 [1] : vector<2x256xf32> to vector<2xf32>
    %111 = vector.shape_cast %110 : vector<2xf32> to vector<2x1xf32>
    %cst_19 = arith.constant 1.000000e-30 : f32
    %112 = vector.broadcast %cst_19 : f32 to vector<2x1xf32>
    %113 = arith.addf %56, %112 : vector<2x1xf32>
    %114 = arith.divf %111, %113 : vector<2x1xf32>
    %115 = vector.broadcast %114 : vector<2x1xf32> to vector<2x256xf32>
    %116 = arith.mulf %115, %62 : vector<2x256xf32>
    %117 = arith.addf %103, %116 : vector<2x256xf32>
    %118 = vector.broadcast %114 : vector<2x1xf32> to vector<2x256xf32>
    %119 = arith.mulf %118, %65 : vector<2x256xf32>
    %120 = arith.addf %106, %119 : vector<2x256xf32>
    %c2_i32 = arith.constant 2 : i32
    %c0_20 = arith.constant 0 : index
    %c0_21 = arith.constant 0 : index
    %121 = vector.load %arg3[%c0_20, %c0_21] : memref<256x512xf32, #tpu.memory_space<vmem>>, vector<256x512xf32>
    %122 = tpu.concatenate %117, %120 in 0 : vector<2x256xf32>, vector<2x256xf32> -> vector<4x256xf32>
    %cst_22 = arith.constant dense<0.000000e+00> : vector<4x512xf32>
    %123 = tpu.matmul %122, %121, %cst_22 {dimension_numbers = #tpu.dot_dimension_numbers<[1], [0], [0], [1], [0, 0, 1, 1], [], []>} : vector<4x256xf32>, vector<256x512xf32>, vector<4x512xf32> -> vector<4x512xf32>
    %124 = vector.extract_strided_slice %123 {offsets = [0, 0], sizes = [2, 256], strides = [1, 1]} : vector<4x512xf32> to vector<2x256xf32>
    %125 = vector.extract_strided_slice %123 {offsets = [2, 256], sizes = [2, 256], strides = [1, 1]} : vector<4x512xf32> to vector<2x256xf32>
    %126 = arith.subf %124, %125 : vector<2x256xf32>
    %127 = vector.extract_strided_slice %123 {offsets = [0, 256], sizes = [2, 256], strides = [1, 1]} : vector<4x512xf32> to vector<2x256xf32>
    %128 = vector.extract_strided_slice %123 {offsets = [2, 0], sizes = [2, 256], strides = [1, 1]} : vector<4x512xf32> to vector<2x256xf32>
    %129 = arith.addf %127, %128 : vector<2x256xf32>
    %130 = vector.broadcast %0 : f32 to vector<2x256xf32>
    %131 = arith.mulf %130, %117 : vector<2x256xf32>
    %132 = arith.addf %126, %131 : vector<2x256xf32>
    %133 = vector.broadcast %1 : f32 to vector<2x256xf32>
    %134 = arith.mulf %133, %120 : vector<2x256xf32>
    %135 = arith.subf %132, %134 : vector<2x256xf32>
    %136 = vector.broadcast %0 : f32 to vector<2x256xf32>
    %137 = arith.mulf %136, %120 : vector<2x256xf32>
    %138 = arith.addf %129, %137 : vector<2x256xf32>
    %139 = vector.broadcast %1 : f32 to vector<2x256xf32>
    %140 = arith.mulf %139, %117 : vector<2x256xf32>
    %141 = arith.addf %138, %140 : vector<2x256xf32>
    %142 = arith.mulf %117, %135 : vector<2x256xf32>
    %143 = arith.mulf %120, %141 : vector<2x256xf32>
    %144 = arith.addf %142, %143 : vector<2x256xf32>
    %cst_23 = arith.constant dense<0.000000e+00> : vector<2xf32>
    %145 = vector.multi_reduction <add>, %144, %cst_23 [1] : vector<2x256xf32> to vector<2xf32>
    %146 = vector.shape_cast %145 : vector<2xf32> to vector<2x1xf32>
    %cst_24 = arith.constant 1.000000e-30 : f32
    %147 = vector.broadcast %cst_24 : f32 to vector<2x1xf32>
    %148 = arith.addf %146, %147 : vector<2x1xf32>
    %149 = arith.divf %111, %148 : vector<2x1xf32>
    %150 = vector.broadcast %149 : vector<2x1xf32> to vector<2x256xf32>
    %151 = arith.mulf %150, %117 : vector<2x256xf32>
    %152 = arith.addf %97, %151 : vector<2x256xf32>
    %153 = vector.broadcast %149 : vector<2x1xf32> to vector<2x256xf32>
    %154 = arith.mulf %153, %120 : vector<2x256xf32>
    %155 = arith.addf %100, %154 : vector<2x256xf32>
    %156 = vector.broadcast %149 : vector<2x1xf32> to vector<2x256xf32>
    %157 = arith.mulf %156, %135 : vector<2x256xf32>
    %158 = arith.subf %103, %157 : vector<2x256xf32>
    %159 = vector.broadcast %149 : vector<2x1xf32> to vector<2x256xf32>
    %160 = arith.mulf %159, %141 : vector<2x256xf32>
    %161 = arith.subf %106, %160 : vector<2x256xf32>
    %162 = arith.mulf %158, %158 : vector<2x256xf32>
    %163 = arith.mulf %161, %161 : vector<2x256xf32>
    %164 = arith.addf %162, %163 : vector<2x256xf32>
    %cst_25 = arith.constant dense<0.000000e+00> : vector<2xf32>
    %165 = vector.multi_reduction <add>, %164, %cst_25 [1] : vector<2x256xf32> to vector<2xf32>
    %166 = vector.shape_cast %165 : vector<2xf32> to vector<2x1xf32>
    %cst_26 = arith.constant 1.000000e-30 : f32
    %167 = vector.broadcast %cst_26 : f32 to vector<2x1xf32>
    %168 = arith.addf %111, %167 : vector<2x1xf32>
    %169 = arith.divf %166, %168 : vector<2x1xf32>
    %170 = vector.broadcast %169 : vector<2x1xf32> to vector<2x256xf32>
    %171 = arith.mulf %170, %117 : vector<2x256xf32>
    %172 = arith.addf %158, %171 : vector<2x256xf32>
    %173 = vector.broadcast %169 : vector<2x1xf32> to vector<2x256xf32>
    %174 = arith.mulf %173, %120 : vector<2x256xf32>
    %175 = arith.addf %161, %174 : vector<2x256xf32>
    %c3_i32 = arith.constant 3 : i32
    %c0_27 = arith.constant 0 : index
    %c0_28 = arith.constant 0 : index
    %176 = vector.load %arg3[%c0_27, %c0_28] : memref<256x512xf32, #tpu.memory_space<vmem>>, vector<256x512xf32>
    %177 = tpu.concatenate %172, %175 in 0 : vector<2x256xf32>, vector<2x256xf32> -> vector<4x256xf32>
    %cst_29 = arith.constant dense<0.000000e+00> : vector<4x512xf32>
    %178 = tpu.matmul %177, %176, %cst_29 {dimension_numbers = #tpu.dot_dimension_numbers<[1], [0], [0], [1], [0, 0, 1, 1], [], []>} : vector<4x256xf32>, vector<256x512xf32>, vector<4x512xf32> -> vector<4x512xf32>
    %179 = vector.extract_strided_slice %178 {offsets = [0, 0], sizes = [2, 256], strides = [1, 1]} : vector<4x512xf32> to vector<2x256xf32>
    %180 = vector.extract_strided_slice %178 {offsets = [2, 256], sizes = [2, 256], strides = [1, 1]} : vector<4x512xf32> to vector<2x256xf32>
    %181 = arith.subf %179, %180 : vector<2x256xf32>
    %182 = vector.extract_strided_slice %178 {offsets = [0, 256], sizes = [2, 256], strides = [1, 1]} : vector<4x512xf32> to vector<2x256xf32>
    %183 = vector.extract_strided_slice %178 {offsets = [2, 0], sizes = [2, 256], strides = [1, 1]} : vector<4x512xf32> to vector<2x256xf32>
    %184 = arith.addf %182, %183 : vector<2x256xf32>
    %185 = vector.broadcast %0 : f32 to vector<2x256xf32>
    %186 = arith.mulf %185, %172 : vector<2x256xf32>
    %187 = arith.addf %181, %186 : vector<2x256xf32>
    %188 = vector.broadcast %1 : f32 to vector<2x256xf32>
    %189 = arith.mulf %188, %175 : vector<2x256xf32>
    %190 = arith.subf %187, %189 : vector<2x256xf32>
    %191 = vector.broadcast %0 : f32 to vector<2x256xf32>
    %192 = arith.mulf %191, %175 : vector<2x256xf32>
    %193 = arith.addf %184, %192 : vector<2x256xf32>
    %194 = vector.broadcast %1 : f32 to vector<2x256xf32>
    %195 = arith.mulf %194, %172 : vector<2x256xf32>
    %196 = arith.addf %193, %195 : vector<2x256xf32>
    %197 = arith.mulf %172, %190 : vector<2x256xf32>
    %198 = arith.mulf %175, %196 : vector<2x256xf32>
    %199 = arith.addf %197, %198 : vector<2x256xf32>
    %cst_30 = arith.constant dense<0.000000e+00> : vector<2xf32>
    %200 = vector.multi_reduction <add>, %199, %cst_30 [1] : vector<2x256xf32> to vector<2xf32>
    %201 = vector.shape_cast %200 : vector<2xf32> to vector<2x1xf32>
    %cst_31 = arith.constant 1.000000e-30 : f32
    %202 = vector.broadcast %cst_31 : f32 to vector<2x1xf32>
    %203 = arith.addf %201, %202 : vector<2x1xf32>
    %204 = arith.divf %166, %203 : vector<2x1xf32>
    %205 = vector.broadcast %204 : vector<2x1xf32> to vector<2x256xf32>
    %206 = arith.mulf %205, %172 : vector<2x256xf32>
    %207 = arith.addf %152, %206 : vector<2x256xf32>
    %208 = vector.broadcast %204 : vector<2x1xf32> to vector<2x256xf32>
    %209 = arith.mulf %208, %175 : vector<2x256xf32>
    %210 = arith.addf %155, %209 : vector<2x256xf32>
    %211 = vector.broadcast %204 : vector<2x1xf32> to vector<2x256xf32>
    %212 = arith.mulf %211, %190 : vector<2x256xf32>
    %213 = arith.subf %158, %212 : vector<2x256xf32>
    %214 = vector.broadcast %204 : vector<2x1xf32> to vector<2x256xf32>
    %215 = arith.mulf %214, %196 : vector<2x256xf32>
    %216 = arith.subf %161, %215 : vector<2x256xf32>
    %217 = arith.mulf %213, %213 : vector<2x256xf32>
    %218 = arith.mulf %216, %216 : vector<2x256xf32>
    %219 = arith.addf %217, %218 : vector<2x256xf32>
    %cst_32 = arith.constant dense<0.000000e+00> : vector<2xf32>
    %220 = vector.multi_reduction <add>, %219, %cst_32 [1] : vector<2x256xf32> to vector<2xf32>
    %221 = vector.shape_cast %220 : vector<2xf32> to vector<2x1xf32>
    %cst_33 = arith.constant 1.000000e-30 : f32
    %222 = vector.broadcast %cst_33 : f32 to vector<2x1xf32>
    %223 = arith.addf %166, %222 : vector<2x1xf32>
    %224 = arith.divf %221, %223 : vector<2x1xf32>
    %225 = vector.broadcast %224 : vector<2x1xf32> to vector<2x256xf32>
    %226 = arith.mulf %225, %172 : vector<2x256xf32>
    %227 = arith.addf %213, %226 : vector<2x256xf32>
    %228 = vector.broadcast %224 : vector<2x1xf32> to vector<2x256xf32>
    %229 = arith.mulf %228, %175 : vector<2x256xf32>
    %230 = arith.addf %216, %229 : vector<2x256xf32>
    %c4_i32 = arith.constant 4 : i32
    %c0_34 = arith.constant 0 : index
    %c0_35 = arith.constant 0 : index
    %231 = vector.load %arg3[%c0_34, %c0_35] : memref<256x512xf32, #tpu.memory_space<vmem>>, vector<256x512xf32>
    %232 = tpu.concatenate %227, %230 in 0 : vector<2x256xf32>, vector<2x256xf32> -> vector<4x256xf32>
    %cst_36 = arith.constant dense<0.000000e+00> : vector<4x512xf32>
    %233 = tpu.matmul %232, %231, %cst_36 {dimension_numbers = #tpu.dot_dimension_numbers<[1], [0], [0], [1], [0, 0, 1, 1], [], []>} : vector<4x256xf32>, vector<256x512xf32>, vector<4x512xf32> -> vector<4x512xf32>
    %234 = vector.extract_strided_slice %233 {offsets = [0, 0], sizes = [2, 256], strides = [1, 1]} : vector<4x512xf32> to vector<2x256xf32>
    %235 = vector.extract_strided_slice %233 {offsets = [2, 256], sizes = [2, 256], strides = [1, 1]} : vector<4x512xf32> to vector<2x256xf32>
    %236 = arith.subf %234, %235 : vector<2x256xf32>
    %237 = vector.extract_strided_slice %233 {offsets = [0, 256], sizes = [2, 256], strides = [1, 1]} : vector<4x512xf32> to vector<2x256xf32>
    %238 = vector.extract_strided_slice %233 {offsets = [2, 0], sizes = [2, 256], strides = [1, 1]} : vector<4x512xf32> to vector<2x256xf32>
    %239 = arith.addf %237, %238 : vector<2x256xf32>
    %240 = vector.broadcast %0 : f32 to vector<2x256xf32>
    %241 = arith.mulf %240, %227 : vector<2x256xf32>
    %242 = arith.addf %236, %241 : vector<2x256xf32>
    %243 = vector.broadcast %1 : f32 to vector<2x256xf32>
    %244 = arith.mulf %243, %230 : vector<2x256xf32>
    %245 = arith.subf %242, %244 : vector<2x256xf32>
    %246 = vector.broadcast %0 : f32 to vector<2x256xf32>
    %247 = arith.mulf %246, %230 : vector<2x256xf32>
    %248 = arith.addf %239, %247 : vector<2x256xf32>
    %249 = vector.broadcast %1 : f32 to vector<2x256xf32>
    %250 = arith.mulf %249, %227 : vector<2x256xf32>
    %251 = arith.addf %248, %250 : vector<2x256xf32>
    %252 = arith.mulf %227, %245 : vector<2x256xf32>
    %253 = arith.mulf %230, %251 : vector<2x256xf32>
    %254 = arith.addf %252, %253 : vector<2x256xf32>
    %cst_37 = arith.constant dense<0.000000e+00> : vector<2xf32>
    %255 = vector.multi_reduction <add>, %254, %cst_37 [1] : vector<2x256xf32> to vector<2xf32>
    %256 = vector.shape_cast %255 : vector<2xf32> to vector<2x1xf32>
    %cst_38 = arith.constant 1.000000e-30 : f32
    %257 = vector.broadcast %cst_38 : f32 to vector<2x1xf32>
    %258 = arith.addf %256, %257 : vector<2x1xf32>
    %259 = arith.divf %221, %258 : vector<2x1xf32>
    %260 = vector.broadcast %259 : vector<2x1xf32> to vector<2x256xf32>
    %261 = arith.mulf %260, %227 : vector<2x256xf32>
    %262 = arith.addf %207, %261 : vector<2x256xf32>
    %263 = vector.broadcast %259 : vector<2x1xf32> to vector<2x256xf32>
    %264 = arith.mulf %263, %230 : vector<2x256xf32>
    %265 = arith.addf %210, %264 : vector<2x256xf32>
    %266 = vector.broadcast %259 : vector<2x1xf32> to vector<2x256xf32>
    %267 = arith.mulf %266, %245 : vector<2x256xf32>
    %268 = arith.subf %213, %267 : vector<2x256xf32>
    %269 = vector.broadcast %259 : vector<2x1xf32> to vector<2x256xf32>
    %270 = arith.mulf %269, %251 : vector<2x256xf32>
    %271 = arith.subf %216, %270 : vector<2x256xf32>
    %272 = arith.mulf %268, %268 : vector<2x256xf32>
    %273 = arith.mulf %271, %271 : vector<2x256xf32>
    %274 = arith.addf %272, %273 : vector<2x256xf32>
    %cst_39 = arith.constant dense<0.000000e+00> : vector<2xf32>
    %275 = vector.multi_reduction <add>, %274, %cst_39 [1] : vector<2x256xf32> to vector<2xf32>
    %276 = vector.shape_cast %275 : vector<2xf32> to vector<2x1xf32>
    %cst_40 = arith.constant 1.000000e-30 : f32
    %277 = vector.broadcast %cst_40 : f32 to vector<2x1xf32>
    %278 = arith.addf %221, %277 : vector<2x1xf32>
    %279 = arith.divf %276, %278 : vector<2x1xf32>
    %280 = vector.broadcast %279 : vector<2x1xf32> to vector<2x256xf32>
    %281 = arith.mulf %280, %227 : vector<2x256xf32>
    %282 = arith.addf %268, %281 : vector<2x256xf32>
    %283 = vector.broadcast %279 : vector<2x1xf32> to vector<2x256xf32>
    %284 = arith.mulf %283, %230 : vector<2x256xf32>
    %285 = arith.addf %271, %284 : vector<2x256xf32>
    %c5_i32 = arith.constant 5 : i32
    %c0_41 = arith.constant 0 : index
    %c0_42 = arith.constant 0 : index
    %286 = vector.load %arg3[%c0_41, %c0_42] : memref<256x512xf32, #tpu.memory_space<vmem>>, vector<256x512xf32>
    %287 = tpu.concatenate %282, %285 in 0 : vector<2x256xf32>, vector<2x256xf32> -> vector<4x256xf32>
    %cst_43 = arith.constant dense<0.000000e+00> : vector<4x512xf32>
    %288 = tpu.matmul %287, %286, %cst_43 {dimension_numbers = #tpu.dot_dimension_numbers<[1], [0], [0], [1], [0, 0, 1, 1], [], []>} : vector<4x256xf32>, vector<256x512xf32>, vector<4x512xf32> -> vector<4x512xf32>
    %289 = vector.extract_strided_slice %288 {offsets = [0, 0], sizes = [2, 256], strides = [1, 1]} : vector<4x512xf32> to vector<2x256xf32>
    %290 = vector.extract_strided_slice %288 {offsets = [2, 256], sizes = [2, 256], strides = [1, 1]} : vector<4x512xf32> to vector<2x256xf32>
    %291 = arith.subf %289, %290 : vector<2x256xf32>
    %292 = vector.extract_strided_slice %288 {offsets = [0, 256], sizes = [2, 256], strides = [1, 1]} : vector<4x512xf32> to vector<2x256xf32>
    %293 = vector.extract_strided_slice %288 {offsets = [2, 0], sizes = [2, 256], strides = [1, 1]} : vector<4x512xf32> to vector<2x256xf32>
    %294 = arith.addf %292, %293 : vector<2x256xf32>
    %295 = vector.broadcast %0 : f32 to vector<2x256xf32>
    %296 = arith.mulf %295, %282 : vector<2x256xf32>
    %297 = arith.addf %291, %296 : vector<2x256xf32>
    %298 = vector.broadcast %1 : f32 to vector<2x256xf32>
    %299 = arith.mulf %298, %285 : vector<2x256xf32>
    %300 = arith.subf %297, %299 : vector<2x256xf32>
    %301 = vector.broadcast %0 : f32 to vector<2x256xf32>
    %302 = arith.mulf %301, %285 : vector<2x256xf32>
    %303 = arith.addf %294, %302 : vector<2x256xf32>
    %304 = vector.broadcast %1 : f32 to vector<2x256xf32>
    %305 = arith.mulf %304, %282 : vector<2x256xf32>
    %306 = arith.addf %303, %305 : vector<2x256xf32>
    %307 = arith.mulf %282, %300 : vector<2x256xf32>
    %308 = arith.mulf %285, %306 : vector<2x256xf32>
    %309 = arith.addf %307, %308 : vector<2x256xf32>
    %cst_44 = arith.constant dense<0.000000e+00> : vector<2xf32>
    %310 = vector.multi_reduction <add>, %309, %cst_44 [1] : vector<2x256xf32> to vector<2xf32>
    %311 = vector.shape_cast %310 : vector<2xf32> to vector<2x1xf32>
    %cst_45 = arith.constant 1.000000e-30 : f32
    %312 = vector.broadcast %cst_45 : f32 to vector<2x1xf32>
    %313 = arith.addf %311, %312 : vector<2x1xf32>
    %314 = arith.divf %276, %313 : vector<2x1xf32>
    %315 = vector.broadcast %314 : vector<2x1xf32> to vector<2x256xf32>
    %316 = arith.mulf %315, %282 : vector<2x256xf32>
    %317 = arith.addf %262, %316 : vector<2x256xf32>
    %318 = vector.broadcast %314 : vector<2x1xf32> to vector<2x256xf32>
    %319 = arith.mulf %318, %285 : vector<2x256xf32>
    %320 = arith.addf %265, %319 : vector<2x256xf32>
    %321 = vector.broadcast %314 : vector<2x1xf32> to vector<2x256xf32>
    %322 = arith.mulf %321, %300 : vector<2x256xf32>
    %323 = arith.subf %268, %322 : vector<2x256xf32>
    %324 = vector.broadcast %314 : vector<2x1xf32> to vector<2x256xf32>
    %325 = arith.mulf %324, %306 : vector<2x256xf32>
    %326 = arith.subf %271, %325 : vector<2x256xf32>
    %327 = arith.mulf %323, %323 : vector<2x256xf32>
    %328 = arith.mulf %326, %326 : vector<2x256xf32>
    %329 = arith.addf %327, %328 : vector<2x256xf32>
    %cst_46 = arith.constant dense<0.000000e+00> : vector<2xf32>
    %330 = vector.multi_reduction <add>, %329, %cst_46 [1] : vector<2x256xf32> to vector<2xf32>
    %331 = vector.shape_cast %330 : vector<2xf32> to vector<2x1xf32>
    %cst_47 = arith.constant 1.000000e-30 : f32
    %332 = vector.broadcast %cst_47 : f32 to vector<2x1xf32>
    %333 = arith.addf %276, %332 : vector<2x1xf32>
    %334 = arith.divf %331, %333 : vector<2x1xf32>
    %335 = vector.broadcast %334 : vector<2x1xf32> to vector<2x256xf32>
    %336 = arith.mulf %335, %282 : vector<2x256xf32>
    %337 = arith.addf %323, %336 : vector<2x256xf32>
    %338 = vector.broadcast %334 : vector<2x1xf32> to vector<2x256xf32>
    %339 = arith.mulf %338, %285 : vector<2x256xf32>
    %340 = arith.addf %326, %339 : vector<2x256xf32>
    %c0_48 = arith.constant 0 : index
    %c0_49 = arith.constant 0 : index
    %341 = vector.load %arg4[%c0_48, %c0_49] : memref<2x256xf32, #tpu.memory_space<vmem>>, vector<2x256xf32>
    tpu.vector_store %arg4[%c0_48, %c0_49], %317 {strides = array<i32>} : memref<2x256xf32, #tpu.memory_space<vmem>>, vector<2x256xf32>,
    %c0_50 = arith.constant 0 : index
    %c0_51 = arith.constant 0 : index
    %342 = vector.load %arg5[%c0_50, %c0_51] : memref<2x256xf32, #tpu.memory_space<vmem>>, vector<2x256xf32>
    tpu.vector_store %arg5[%c0_50, %c0_51], %320 {strides = array<i32>} : memref<2x256xf32, #tpu.memory_space<vmem>>, vector<2x256xf32>,
    return
  }
}

</mosaic_0001>

<bundles_post_ra>
// kernel: tpu_custom_call.1
= control target key start
LH: loop header
LB: loop body
LE: loop exit
PB: predicated region body
PF: predicated region fallthrough
CT: control target
= control target key end

     0   :  { %11 = vsyncpa [#allocation5], 0  ;;  %s4420_s0 = inlined_call_operand.hbm [shape: f32[2], index: 0, kind: input, shape index: {}]   ;;  %s4421_s1 = inlined_call_operand.hbm [shape: f32[2,256], index: 1, kind: input, shape index: {}]   ;;  %s4422_s2 = inlined_call_operand.vmem [shape: f32[2,256], index: 2, kind: input, shape index: {}]   ;;  %s4423_s3 = inlined_call_operand.hbm [shape: f32[256,512], index: 3, kind: input, shape index: {}]   ;;  %s4424_s4 = inlined_call_operand.hbm [shape: f32[2,256], index: 4, kind: output, shape index: {0}]   ;;  %s4425_s5 = inlined_call_operand.hbm [shape: f32[2,256], index: 5, kind: output, shape index: {1}]  }
   0x1   :  { %12 = vsyncpa [#allocation3], 0 }
   0x2   :  { %13 = vsyncpa [#allocation8], 0 }
   0x3   :  { %14 = vsyncpa [#allocation4], 0 }
   0x4   :  { %15 = vsyncpa [#allocation11], 0  ;;  %s3265_s20 = scalar_lea.hbm %s4420_s0, 16 }
   0x5   :  { %p3266_p0 = scmp.ne.s32.totalorder %s4420_s0, %s3265_s20  ;;  %p3269_p1 = scmp.lt.u32.totalorder %s3265_s20, %s4420_s0 }
   0x7   :  { %p3271_p2 = pnand %p3269_p1, %p3266_p0 }
   0x9   :  { %3274 = shalt.err (!%p3271_p2)
}
   0xa   :  { %s3373_s25 = smov [#allocation2]   ;;  %s3374_s28 = smov [#allocation6]  }
   0xb   :  { %23 = dma.hbm_to_smem %s4420_s0, 16, %s3373_s25, [#allocation5]  }
   0xc   :  { %s30_s29 = sshll.u32 %s3374_s28, 4  ;;  %s3375_s30 = smov [#allocation7]   ;;  %s31_s29 = int_to_ptr.vmem [resolvable:$true] %s30_s29 }
   0xd   :  { %s41_s6 = sshll.u32 %s3375_s30, 4  ;;  %s3275_s9 = scalar_lea.hbm %s4421_s1, 64  ;;  %s42_s6 = int_to_ptr.vmem [resolvable:$true] %s41_s6 }
   0xe   :  { %p3276_p3 = scmp.ne.s32.totalorder %s4421_s1, %s3275_s9  ;;  %p3279_p4 = scmp.lt.u32.totalorder %s3275_s9, %s4421_s1 }
  0x10   :  { %p3281_p5 = pnand %p3279_p4, %p3276_p3 }
  0x12   :  { %3284 = shalt.err (!%p3281_p5)
}
  0x13   :  { %s3285_s0 = scalar_lea.vmem %s31_s29, 64  ;;  %p3290_p7 = scmp.lt.s32.totalorder %s31_s29, %s31_s29 }
  0x14   :  { %p3286_p6 = scmp.ne.s32.totalorder %s31_s29, %s3285_s0  ;;  %p3291_p8 = scmp.lt.s32.totalorder %s3285_s0, %s3285_s0 }
  0x16   :  { %p3292_p9 = por %p3291_p8, %p3290_p7 }
  0x18   :  { %p3293_p10 = pnand %p3292_p9, %p3286_p6 }
  0x1a   :  { %3296 = shalt.err (!%p3293_p10)
}
  0x1b   :  { %33 = dma.hbm_to_vmem [thread:$0]  %s4421_s1, 64, %s31_s29, [#allocation3]  }
  0x1c   :  { %s3297_s18 = scalar_lea.hbm %s4423_s3, 16384 }
  0x1d   :  { %p3298_p11 = scmp.ne.s32.totalorder %s4423_s3, %s3297_s18  ;;  %p3301_p12 = scmp.lt.u32.totalorder %s3297_s18, %s4423_s3 }
  0x1f   :  { %p3303_p13 = pnand %p3301_p12, %p3298_p11 }
  0x21   :  { %3306 = shalt.err (!%p3303_p13)
}
  0x22   :  { %s3307_s23 = scalar_lea.vmem %s42_s6, 16384  ;;  %p3312_p1 = scmp.lt.s32.totalorder %s42_s6, %s42_s6 }
  0x23   :  { %p3308_p0 = scmp.ne.s32.totalorder %s42_s6, %s3307_s23  ;;  %p3313_p2 = scmp.lt.s32.totalorder %s3307_s23, %s3307_s23 }
  0x25   :  { %p3314_p3 = por %p3313_p2, %p3312_p1 }
  0x27   :  { %p3315_p4 = pnand %p3314_p3, %p3308_p0 }
  0x29   :  { %3318 = shalt.err (!%p3315_p4)
}
  0x2a   :  { %s3376_s1 = smov 512   ;;  %s3377_s24 = smov 32  }
  0x2b   :  { %47 = dma.hbm_to_vmem [thread:$0]  %s4423_s3, 16384, %s42_s6, [#allocation8], %s3376_s1, %s3376_s1, %s3377_s24  }
  0x2c   :  { %3363 = dma.done.wait [#allocation5], 16  }
  0x2d   :  { %3364 = vsyncadd [#allocation5], 4294967280 }
  0x2e   :  { %3365 = dma.done.wait [#allocation3], 64  }
  0x2f   :  { %3366 = vsyncadd [#allocation3], 4294967232 }
  0x30   :  { %3367 = dma.done.wait [#allocation8], 16384  }
  0x31   :  { %3368 = vsyncadd [#allocation8], 4294950912 }
  0x32   :  { %57 = sfence }
  0x33   :  { %v83_v0 = vld [vmem:[#allocation7 + $0x8] sm:$0xff]  ;;  %v85_v2 = vld [vmem:[#allocation7 + $0x18] sm:$0xff]  ;;  %v82_v5 = vld [vmem:[#allocation7] sm:$0xff]  ;;  %vm76_vm0 = vcmask 1041408   ;;  %s2463_s28 = sld [smem:[#allocation2 + $0x1]]  ;;  %s3379_s29 = smov [#allocation9]  }
  0x34   :  { %v87_v1 = vld [vmem:[#allocation7 + $0x28] sm:$0xff]  ;;  %v89_v4 = vld [vmem:[#allocation7 + $0x38] sm:$0xff]  ;;  %v86_v6 = vld [vmem:[#allocation7 + $0x20] sm:$0xff]  ;;  %s2438_s30 = sshll.u32 %s3379_s29, 4  ;;  %s3380_s6 = smov [#allocation10]   ;;  %s2439_s30 = int_to_ptr.vmem [resolvable:$true] %s2438_s30 }
  0x35   :  { %v3447_v3 = vpack.c.bf16 %v87_v1, %v83_v0  ;;  %v3449_v7 = vpack.c.bf16 %v89_v4, %v85_v2  ;;  %v3451_v8 = vpack.c.bf16 %v86_v6, %v82_v5  ;;  %v84_v9 = vld [vmem:[#allocation7 + $0x10] sm:$0xff]  ;;  %v91_v11 = vld [vmem:[#allocation7 + $0x48] sm:$0xff]  ;;  %v93_v14 = vld [vmem:[#allocation7 + $0x58] sm:$0xff]  ;;  %s2448_s7 = sshll.u32 %s3380_s6, 4  ;;  %s3319_s8 = scalar_lea.vmem %s2439_s30, 64  ;;  %s2449_s7 = int_to_ptr.vmem [resolvable:$true] %s2448_s7 }
  0x36   :  { %v88_v10 = vld [vmem:[#allocation7 + $0x30] sm:$0xff]  ;;  %v95_v13 = vld [vmem:[#allocation7 + $0x68] sm:$0xff]  ;;  %v97_v15 = vld [vmem:[#allocation7 + $0x78] sm:$0xff]  ;;  %p3320_p5 = scmp.ne.s32.totalorder %s2439_s30, %s3319_s8  ;;  %p3324_p6 = scmp.lt.s32.totalorder %s2439_s30, %s2439_s30 }
  0x37   :  { %4532 = vst [vmem:[#allocation17_spill] sm:$0xff] %v3447_v3  ;;  %4533 = vst [vmem:[#allocation18_spill] sm:$0xff] %v3449_v7  ;;  %2467 = vmatprep.subr.bf16.mxu0 %v3447_v3  ;;  %v3454_v12 = vpack.c.bf16 %v88_v10, %v84_v9  ;;  %2531 = vmatprep.subr.bf16.mxu1 %v3449_v7  ;;  %v3458_v16 = vpack.c.bf16 %v95_v13, %v91_v11  ;;  %v90_v18 = vld [vmem:[#allocation7 + $0x40] sm:$0xff]  ;;  %v92_v20 = vld [vmem:[#allocation7 + $0x50] sm:$0xff]  ;;  %p3325_p7 = scmp.lt.s32.totalorder %s3319_s8, %s3319_s8 }
  0x38   :  { %2469 = vmatpush1.bf16.msra.mxu0 %v3451_v8  ;;  %v3460_v17 = vpack.c.bf16 %v97_v15, %v93_v14  ;;  %v94_v19 = vld [vmem:[#allocation7 + $0x60] sm:$0xff]  ;;  %v96_v22 = vld [vmem:[#allocation7 + $0x70] sm:$0xff]  ;;  %v99_v23 = vld [vmem:[#allocation7 + $0x88] sm:$0xff] }
  0x39   :  { %2533 = vmatpush1.bf16.msra.mxu1 %v3454_v12  ;;  %v3463_v21 = vpack.c.bf16 %v94_v19, %v90_v18  ;;  %v103_v24 = vld [vmem:[#allocation7 + $0xa8] sm:$0xff]  ;;  %2471 = vmatprep.subr.bf16.mxu0 %v3458_v16  ;;  %v3467_v25 = vpack.c.bf16 %v96_v22, %v92_v20  ;;  %v101_v27 = vld [vmem:[#allocation7 + $0x98] sm:$0xff]  ;;  %v98_v29 = vld [vmem:[#allocation7 + $0x80] sm:$0xff]  ;;  %p3326_p8 = por %p3325_p7, %p3324_p6 }
  0x3a   :  { %2535 = vmatprep.subr.bf16.mxu1 %v3460_v17  ;;  %v3469_v26 = vpack.c.bf16 %v103_v24, %v99_v23  ;;  %v105_v28 = vld [vmem:[#allocation7 + $0xb8] sm:$0xff]  ;;  %v102_v31 = vld [vmem:[#allocation7 + $0xa0] sm:$0xff]  ;;  %v100_v32 = vld [vmem:[#allocation7 + $0x90] sm:$0xff] }
  0x3b   :  { %v3471_v30 = vpack.c.bf16 %v105_v28, %v101_v27  ;;  %v104_v33 = vld [vmem:[#allocation7 + $0xb0] sm:$0xff]  ;;  %v3474_v34 = vpack.c.bf16 %v102_v31, %v98_v29  ;;  %v107_v35 = vld [vmem:[#allocation7 + $0xc8] sm:$0xff]  ;;  %v109_v37 = vld [vmem:[#allocation7 + $0xd8] sm:$0xff]  ;;  %p3327_p9 = pnand %p3326_p8, %p3320_p5 }
  0x3c   :  { %2473 = vmatpush1.bf16.msra.mxu0 %v3463_v21  ;;  %v111_v36 = vld [vmem:[#allocation7 + $0xe8] sm:$0xff]  ;;  %v3478_v38 = vpack.c.bf16 %v104_v33, %v100_v32  ;;  %v113_v40 = vld [vmem:[#allocation7 + $0xf8] sm:$0xff]  ;;  %v106_v41 = vld [vmem:[#allocation7 + $0xc0] sm:$0xff] }
  0x3d   :  { %2537 = vmatpush1.bf16.msra.mxu1 %v3467_v25  ;;  %2475 = vmatprep.subr.bf16.mxu0 %v3469_v26  ;;  %v3480_v39 = vpack.c.bf16 %v111_v36, %v107_v35  ;;  %v110_v42 = vld [vmem:[#allocation7 + $0xe0] sm:$0xff]  ;;  %v3483_v43 = vpack.c.bf16 %v113_v40, %v109_v37  ;;  %v108_v44 = vld [vmem:[#allocation7 + $0xd0] sm:$0xff]  ;;  %v115_v46 = vld [vmem:[#allocation7 + $0x108] sm:$0xff] }
  0x3e   :  { %2539 = vmatprep.subr.bf16.mxu1 %v3471_v30  ;;  %v112_v45 = vld [vmem:[#allocation7 + $0xf0] sm:$0xff]  ;;  %v119_v47 = vld [vmem:[#allocation7 + $0x128] sm:$0xff]  ;;  %v117_v48 = vld [vmem:[#allocation7 + $0x118] sm:$0xff]  ;;  %v3486_v50 = vpack.c.bf16 %v110_v42, %v106_v41 }
  0x3f   :  { %v121_v49 = vld [vmem:[#allocation7 + $0x138] sm:$0xff]  ;;  %v3490_v51 = vpack.c.bf16 %v112_v45, %v108_v44  ;;  %v3492_v52 = vpack.c.bf16 %v119_v47, %v115_v46  ;;  %v114_v53 = vld [vmem:[#allocation7 + $0x100] sm:$0xff]  ;;  %v116_v55 = vld [vmem:[#allocation7 + $0x110] sm:$0xff] }
  0x40   :  { %2477 = vmatpush1.bf16.msra.mxu0 %v3474_v34  ;;  %v118_v54 = vld [vmem:[#allocation7 + $0x120] sm:$0xff]  ;;  %v3495_v56 = vpack.c.bf16 %v121_v49, %v117_v48  ;;  %v120_v57 = vld [vmem:[#allocation7 + $0x130] sm:$0xff]  ;;  %v123_v58 = vld [vmem:[#allocation7 + $0x148] sm:$0xff] }
  0x41   :  { %2541 = vmatpush1.bf16.msra.mxu1 %v3478_v38  ;;  %2479 = vmatprep.subr.bf16.mxu0 %v3480_v39  ;;  %v127_v59 = vld [vmem:[#allocation7 + $0x168] sm:$0xff]  ;;  %v125_v60 = vld [vmem:[#allocation7 + $0x158] sm:$0xff]  ;;  %v3498_v62 = vpack.c.bf16 %v118_v54, %v114_v53  ;;  %v3502_v63 = vpack.c.bf16 %v120_v57, %v116_v55  ;;  %v122_v1 = vld [vmem:[#allocation7 + $0x140] sm:$0xff] }
  0x42   :  { %2543 = vmatprep.subr.bf16.mxu1 %v3483_v43  ;;  %v129_v61 = vld [vmem:[#allocation7 + $0x178] sm:$0xff]  ;;  %v3504_v0 = vpack.c.bf16 %v127_v59, %v123_v58  ;;  %v126_v2 = vld [vmem:[#allocation7 + $0x160] sm:$0xff]  ;;  %v124_v4 = vld [vmem:[#allocation7 + $0x150] sm:$0xff] }
  0x43   :  { %v3507_v5 = vpack.c.bf16 %v129_v61, %v125_v60  ;;  %v128_v6 = vld [vmem:[#allocation7 + $0x170] sm:$0xff]  ;;  %v131_v9 = vld [vmem:[#allocation7 + $0x188] sm:$0xff]  ;;  %v133_v11 = vld [vmem:[#allocation7 + $0x198] sm:$0xff]  ;;  %v3510_v14 = vpack.c.bf16 %v126_v2, %v122_v1 }
  0x44   :  { %2481 = vmatpush1.bf16.msra.mxu0 %v3486_v50  ;;  %v135_v10 = vld [vmem:[#allocation7 + $0x1a8] sm:$0xff]  ;;  %v137_v13 = vld [vmem:[#allocation7 + $0x1b8] sm:$0xff]  ;;  %v3514_v15 = vpack.c.bf16 %v128_v6, %v124_v4  ;;  %v130_v19 = vld [vmem:[#allocation7 + $0x180] sm:$0xff]  ;;  %v3378_v4 = vmov 1983009808  }
  0x45   :  { %2545 = vmatpush1.bf16.msra.mxu1 %v3490_v51  ;;  %2483 = vmatprep.subr.bf16.mxu0 %v3492_v52  ;;  %4534 = vst [vmem:[#allocation19_spill] sm:$0xff] %v3510_v14  ;;  %v3516_v18 = vpack.c.bf16 %v135_v10, %v131_v9  ;;  %v134_v20 = vld [vmem:[#allocation7 + $0x1a0] sm:$0xff]  ;;  %v132_v22 = vld [vmem:[#allocation7 + $0x190] sm:$0xff]  ;;  %v3519_v23 = vpack.c.bf16 %v137_v13, %v133_v11  ;;  %v139_v27 = vld [vmem:[#allocation7 + $0x1c8] sm:$0xff]  ;;  %v67_v6 = vunpack.c.l.s4 %v3378_v4  ;;  %v69_v9 = vlaneseq }
  0x46   :  { %2547 = vmatprep.subr.bf16.mxu1 %v3495_v56  ;;  %4535 = vst [vmem:[#allocation20_spill] sm:$0xff] %v3514_v15  ;;  %v136_v24 = vld [vmem:[#allocation7 + $0x1b0] sm:$0xff]  ;;  %v143_v28 = vld [vmem:[#allocation7 + $0x1e8] sm:$0xff]  ;;  %v141_v29 = vld [vmem:[#allocation7 + $0x1d8] sm:$0xff]  ;;  %v3522_v32 = vpack.c.bf16 %v134_v20, %v130_v19 }
  0x47   :  { %4536 = vst [vmem:[#allocation21_spill] sm:$0xff] %v3516_v18  ;;  %4537 = vst [vmem:[#allocation22_spill] sm:$0xff] %v3519_v23  ;;  %v145_v31 = vld [vmem:[#allocation7 + $0x1f8] sm:$0xff]  ;;  %v3526_v33 = vpack.c.bf16 %v136_v24, %v132_v22  ;;  %v3528_v35 = vpack.c.bf16 %v143_v28, %v139_v27  ;;  %v138_v36 = vld [vmem:[#allocation7 + $0x1c0] sm:$0xff] }
  0x48   :  { %2485 = vmatpush1.bf16.msra.mxu0 %v3498_v62  ;;  %4538 = vst [vmem:[#allocation23_spill] sm:$0xff] %v3522_v32  ;;  %v142_v37 = vld [vmem:[#allocation7 + $0x1e0] sm:$0xff]  ;;  %v140_v40 = vld [vmem:[#allocation7 + $0x1d0] sm:$0xff]  ;;  %v3531_v41 = vpack.c.bf16 %v145_v31, %v141_v29  ;;  %v147_v44 = vld [vmem:[#allocation7 + $0x208] sm:$0xff] }
  0x49   :  { %2549 = vmatpush1.bf16.msra.mxu1 %v3502_v63  ;;  %2487 = vmatprep.subr.bf16.mxu0 %v3504_v0  ;;  %4539 = vst [vmem:[#allocation24_spill] sm:$0xff] %v3526_v33  ;;  %4540 = vst [vmem:[#allocation25_spill] sm:$0xff] %v3528_v35  ;;  %v144_v42 = vld [vmem:[#allocation7 + $0x1f0] sm:$0xff]  ;;  %v151_v45 = vld [vmem:[#allocation7 + $0x228] sm:$0xff]  ;;  %v3534_v48 = vpack.c.bf16 %v142_v37, %v138_v36  ;;  %v68_v37 = vunpack.c.0.s8 %v67_v6 }
  0x4a   :  { %2551 = vmatprep.subr.bf16.mxu1 %v3507_v5  ;;  %4541 = vst [vmem:[#allocation26_spill] sm:$0xff] %v3531_v41  ;;  %v149_v46 = vld [vmem:[#allocation7 + $0x218] sm:$0xff]  ;;  %v3538_v49 = vpack.c.bf16 %v144_v42, %v140_v40  ;;  %v3540_v53 = vpack.c.bf16 %v151_v45, %v147_v44  ;;  %v146_v54 = vld [vmem:[#allocation7 + $0x200] sm:$0xff]  ;;  %v148_v57 = vld [vmem:[#allocation7 + $0x210] sm:$0xff]  ;;  %v70_v40 = vshrl.u32 %v69_v9, 7 }
  0x4b   :  { %v153_v47 = vld [vmem:[#allocation7 + $0x238] sm:$0xff]  ;;  %4542 = vst [vmem:[#allocation27_spill] sm:$0xff] %v3534_v48  ;;  %v150_v55 = vld [vmem:[#allocation7 + $0x220] sm:$0xff]  ;;  %v152_v59 = vld [vmem:[#allocation7 + $0x230] sm:$0xff] }
  0x4c   :  { %2489 = vmatpush1.bf16.msra.mxu0 %v3510_v14  ;;  %4543 = vst [vmem:[#allocation28_spill] sm:$0xff] %v3538_v49  ;;  %4544 = vst [vmem:[#allocation29_spill] sm:$0xff] %v3540_v53  ;;  %v3543_v58 = vpack.c.bf16 %v153_v47, %v149_v46  ;;  %v155_v60 = vld [vmem:[#allocation7 + $0x248] sm:$0xff]  ;;  %v157_v1 = vld [vmem:[#allocation7 + $0x258] sm:$0xff]  ;;  %v3546_v10 = vpack.c.bf16 %v150_v55, %v146_v54  ;;  %v3550_v11 = vpack.c.bf16 %v152_v59, %v148_v57 }
  0x4d   :  { %2553 = vmatpush1.bf16.msra.mxu1 %v3514_v15  ;;  %2491 = vmatprep.subr.bf16.mxu0 %v3516_v18  ;;  %v159_v61 = vld [vmem:[#allocation7 + $0x268] sm:$0xff]  ;;  %v161_v2 = vld [vmem:[#allocation7 + $0x278] sm:$0xff]  ;;  %v154_v19 = vld [vmem:[#allocation7 + $0x240] sm:$0xff] }
  0x4e   :  { %2555 = vmatprep.subr.bf16.mxu1 %v3519_v23  ;;  %4545 = vst [vmem:[#allocation30_spill] sm:$0xff] %v3543_v58  ;;  %4546 = vst [vmem:[#allocation31_spill] sm:$0xff] %v3546_v10  ;;  %v3552_v13 = vpack.c.bf16 %v159_v61, %v155_v60  ;;  %v158_v20 = vld [vmem:[#allocation7 + $0x260] sm:$0xff]  ;;  %v156_v22 = vld [vmem:[#allocation7 + $0x250] sm:$0xff]  ;;  %v3555_v24 = vpack.c.bf16 %v161_v2, %v157_v1  ;;  %v3569_v2 = vsub.s32 %v68_v37, %v70_v40 }
  0x4f   :  { %4547 = vst [vmem:[#allocation32_spill] sm:$0xff] %v3550_v11  ;;  %v160_v27 = vld [vmem:[#allocation7 + $0x270] sm:$0xff]  ;;  %v163_v28 = vld [vmem:[#allocation7 + $0x288] sm:$0xff]  ;;  %v165_v31 = vld [vmem:[#allocation7 + $0x298] sm:$0xff]  ;;  %v3558_v42 = vpack.c.bf16 %v158_v20, %v154_v19 }
  0x50   :  { %2493 = vmatpush1.bf16.msra.mxu0 %v3522_v32  ;;  %4548 = vst [vmem:[#allocation33_spill] sm:$0xff] %v3552_v13  ;;  %4549 = vst [vmem:[#allocation34_spill] sm:$0xff] %v3555_v24  ;;  %v167_v29 = vld [vmem:[#allocation7 + $0x2a8] sm:$0xff]  ;;  %v169_v36 = vld [vmem:[#allocation7 + $0x2b8] sm:$0xff]  ;;  %v3562_v44 = vpack.c.bf16 %v160_v27, %v156_v22 }
  0x51   :  { %2557 = vmatpush1.bf16.msra.mxu1 %v3526_v33  ;;  %2495 = vmatprep.subr.bf16.mxu0 %v3528_v35  ;;  %4550 = vst [vmem:[#allocation35_spill] sm:$0xff] %v3558_v42  ;;  %v3564_v45 = vpack.c.bf16 %v167_v29, %v163_v28  ;;  %v162_v46 = vld [vmem:[#allocation7 + $0x280] sm:$0xff]  ;;  %v164_v54 = vld [vmem:[#allocation7 + $0x290] sm:$0xff]  ;;  %v3567_v55 = vpack.c.bf16 %v169_v36, %v165_v31  ;;  %v171_v59 = vld [vmem:[#allocation7 + $0x2c8] sm:$0xff] }
  0x52   :  { %2559 = vmatprep.subr.bf16.mxu1 %v3531_v41  ;;  %4551 = vst [vmem:[#allocation36_spill] sm:$0xff] %v3562_v44  ;;  %v166_v47 = vld [vmem:[#allocation7 + $0x2a0] sm:$0xff]  ;;  %v168_v57 = vld [vmem:[#allocation7 + $0x2b0] sm:$0xff]  ;;  %v175_v60 = vld [vmem:[#allocation7 + $0x2e8] sm:$0xff] }
  0x53   :  { %4552 = vst [vmem:[#allocation37_spill] sm:$0xff] %v3564_v45  ;;  %4553 = vst [vmem:[#allocation38_spill] sm:$0xff] %v3567_v55  ;;  %v173_v61 = vld [vmem:[#allocation7 + $0x2d8] sm:$0xff]  ;;  %v3572_v4 = vpack.c.bf16 %v166_v47, %v162_v46  ;;  %v170_v6 = vld [vmem:[#allocation7 + $0x2c0] sm:$0xff]  ;;  %v3576_v9 = vpack.c.bf16 %v168_v57, %v164_v54  ;;  %v3578_v19 = vpack.c.bf16 %v175_v60, %v171_v59 }
  0x54   :  { %2497 = vmatpush1.bf16.msra.mxu0 %v3534_v48  ;;  %v177_v1 = vld [vmem:[#allocation7 + $0x2f8] sm:$0xff]  ;;  %4554 = vst [vmem:[#allocation39_spill] sm:$0xff] %v3569_v2  ;;  %v174_v20 = vld [vmem:[#allocation7 + $0x2e0] sm:$0xff]  ;;  %v172_v22 = vld [vmem:[#allocation7 + $0x2d0] sm:$0xff] }
  0x55   :  { %2561 = vmatpush1.bf16.msra.mxu1 %v3538_v49  ;;  %2499 = vmatprep.subr.bf16.mxu0 %v3540_v53  ;;  %4555 = vst [vmem:[#allocation40_spill] sm:$0xff] %v3572_v4  ;;  %4556 = vst [vmem:[#allocation41_spill] sm:$0xff] %v3576_v9  ;;  %v176_v27 = vld [vmem:[#allocation7 + $0x2f0] sm:$0xff]  ;;  %v3581_v28 = vpack.c.bf16 %v177_v1, %v173_v61  ;;  %v179_v29 = vld [vmem:[#allocation7 + $0x308] sm:$0xff]  ;;  %v3595_v54 = vpack.c.bf16 %v174_v20, %v170_v6 }
  0x56   :  { %2563 = vmatprep.subr.bf16.mxu1 %v3543_v58  ;;  %4557 = vst [vmem:[#allocation42_spill] sm:$0xff] %v3578_v19  ;;  %v183_v31 = vld [vmem:[#allocation7 + $0x328] sm:$0xff]  ;;  %v3583_v36 = vld [vmem:[#allocation6] sm:$0xf]  ;;  %v3588_v46 = vld [vmem:[%s4422_s2] sm:$0xf]  ;;  %v3601_v59 = vpack.c.bf16 %v176_v27, %v172_v22 }
  0x57   :  { %4558 = vst [vmem:[#allocation43_spill] sm:$0xff] %v3581_v28  ;;  %4559 = vst [vmem:[#allocation44_spill] sm:$0xff] %v3583_v36  ;;  %v181_v37 = vld [vmem:[#allocation7 + $0x318] sm:$0xff]  ;;  %v3592_v47 = vrot.slane %v3583_v36, %v3569_v2  ;;  %v222_v57 = vcombine.low %v3588_v46, %v3588_v46  ;;  %v3603_v60 = vpack.c.bf16 %v183_v31, %v179_v29  ;;  %v178_v61 = vld [vmem:[#allocation7 + $0x300] sm:$0xff]  ;;  %s58_s2 = sld [smem:[#allocation2]] }
  0x58   :  { %2501 = vmatpush1.bf16.msra.mxu0 %v3546_v10  ;;  %v185_v40 = vld [vmem:[#allocation7 + $0x338] sm:$0xff]  ;;  %4560 = vst [vmem:[#allocation45_spill] sm:$0xff] %v3588_v46  ;;  %4561 = vst [vmem:[#allocation46_spill] sm:$0xff] %v3595_v54  ;;  %v182_v1 = vld [vmem:[#allocation7 + $0x320] sm:$0xff] }
  0x59   :  { %2565 = vmatpush1.bf16.msra.mxu1 %v3550_v11  ;;  %2503 = vmatprep.subr.bf16.mxu0 %v3552_v13  ;;  %4562 = vst [vmem:[#allocation47_spill] sm:$0xff] %v3601_v59  ;;  %4563 = vst [vmem:[#allocation48_spill] sm:$0xff] %v3603_v60  ;;  %v3606_v36 = vpack.c.bf16 %v185_v40, %v181_v37  ;;  %v184_v6 = vld [vmem:[#allocation7 + $0x330] sm:$0xff]  ;;  %v187_v20 = vld [vmem:[#allocation7 + $0x348] sm:$0xff]  ;;  %v3610_v46 = vcombine.high %v3592_v47, %v3592_v47 }
  0x5a   :  { %2567 = vmatprep.subr.bf16.mxu1 %v3555_v24  ;;  %v189_v22 = vld [vmem:[#allocation7 + $0x358] sm:$0xff]  ;;  %v3614_v29 = vpack.c.bf16 %v182_v1, %v178_v61  ;;  %v199_v61 = vld [vmem:[#allocation7 + $0x3a8] sm:$0xff] }
  0x5b   :  { %4564 = vst [vmem:[#allocation49_spill] sm:$0xff] %v3606_v36  ;;  %4565 = vst [vmem:[#allocation50_spill] sm:$0xff] %v3610_v46  ;;  %v193_v27 = vld [vmem:[#allocation7 + $0x378] sm:$0xff] }
  0x5c   :  { %2505 = vmatpush1.bf16.msra.mxu0 %v3558_v42  ;;  %4566 = vst [vmem:[#allocation51_spill] sm:$0xff] %v3614_v29 }
  0x5d   :  { %2569 = vmatpush1.bf16.msra.mxu1 %v3562_v44  ;;  %2507 = vmatprep.subr.bf16.mxu0 %v3564_v45  ;;  %v188_v45 = vld [vmem:[#allocation7 + $0x350] sm:$0xff]  ;;  %v201_v44 = vld [vmem:[#allocation7 + $0x3b8] sm:$0xff] }
  0x5e   :  { %2571 = vmatprep.subr.bf16.mxu1 %v3567_v55  ;;  %v180_v55 = vld [vmem:[#allocation7 + $0x310] sm:$0xff] }
  0x5f   :  { %v3618_v37 = vpack.c.bf16 %v184_v6, %v180_v55 }
  0x60   :  { %2509 = vmatpush1.bf16.msra.mxu0 %v3572_v4  ;;  %v191_v4 = vld [vmem:[#allocation7 + $0x368] sm:$0xff] }
  0x61   :  { %2573 = vmatpush1.bf16.msra.mxu1 %v3576_v9  ;;  %2511 = vmatprep.subr.bf16.mxu0 %v3578_v19  ;;  %v229_v19 = vrot.slane %v222_v57, %v3569_v2  ;;  %4567 = vst [vmem:[#allocation52_spill] sm:$0xff] %v3618_v37  ;;  %v3620_v40 = vpack.c.bf16 %v191_v4, %v187_v20  ;;  %v190_v9 = vld [vmem:[#allocation7 + $0x360] sm:$0xff]  ;;  %v192_v2 = vld [vmem:[#allocation7 + $0x370] sm:$0xff] }
  0x62   :  { %2575 = vmatprep.subr.bf16.mxu1 %v3581_v28  ;;  %v186_v28 = vld [vmem:[#allocation7 + $0x340] sm:$0xff]  ;;  %v3623_v57 = vpack.c.bf16 %v193_v27, %v189_v22  ;;  %v3632_v4 = vpack.c.bf16 %v192_v2, %v188_v45  ;;  %v196_v27 = vld [vmem:[#allocation7 + $0x390] sm:$0xff] }
  0x63   :  { %v237_v31 = vcombine.high %v229_v19, %v229_v19  ;;  %4568 = vst [vmem:[#allocation53_spill] sm:$0xff] %v3620_v40  ;;  %v3628_v55 = vpack.c.bf16 %v190_v9, %v186_v28  ;;  %v194_v20 = vld [vmem:[#allocation7 + $0x380] sm:$0xff]  ;;  %v205_v9 = vld [vmem:[#allocation7 + $0x3d8] sm:$0xff] }
  0x64   :  { %2513 = vmatpush1.bf16.msra.mxu0 %v3595_v54  ;;  %4569 = vst [vmem:[#allocation54_spill] sm:$0xff] %v3623_v57  ;;  %v195_v54 = vld [vmem:[#allocation7 + $0x388] sm:$0xff]  ;;  %4571 = vst [vmem:[#allocation56_spill] sm:$0xff] %v3632_v4  ;;  %v198_v22 = vld [vmem:[#allocation7 + $0x3a0] sm:$0xff] }
  0x65   :  { %2577 = vmatpush1.bf16.msra.mxu1 %v3601_v59  ;;  %2515 = vmatprep.subr.bf16.mxu0 %v3603_v60  ;;  %v241_v1 = vsel %vm76_vm0, %v3610_v46, %v237_v31  ;;  %v197_v59 = vld [vmem:[#allocation7 + $0x398] sm:$0xff]  ;;  %4570 = vst [vmem:[#allocation55_spill] sm:$0xff] %v3628_v55  ;;  %v3634_v6 = vpack.c.bf16 %v199_v61, %v195_v54  ;;  %v203_v46 = vld [vmem:[#allocation7 + $0x3c8] sm:$0xff]  ;;  %v202_v54 = vld [vmem:[#allocation7 + $0x3c0] sm:$0xff] }
  0x66   :  { %2579 = vmatprep.subr.bf16.mxu1 %v3606_v36  ;;  %306 = vmatprep.mubr.f32.mxu0 %v241_v1  ;;  %v3637_v31 = vpack.c.bf16 %v201_v44, %v197_v59  ;;  %v209_v28 = vld [vmem:[#allocation7 + $0x3f8] sm:$0xff]  ;;  %v206_v44 = vld [vmem:[#allocation7 + $0x3e0] sm:$0xff]  ;;  %v204_v61 = vld [vmem:[#allocation7 + $0x3d0] sm:$0xff] }
  0x67   :  { %377 = vmatprep.mubr.f32.mxu1 %v241_v1  ;;  %4572 = vst [vmem:[#allocation57_spill] sm:$0xff] %v3634_v6  ;;  %v200_v1 = vld [vmem:[#allocation7 + $0x3b0] sm:$0xff]  ;;  %v3649_v59 = vpack.c.bf16 %v209_v28, %v205_v9  ;;  %v4586_v28 = vld [vmem:[#allocation43_spill] sm:$0xff] }
  0x68   :  { %2517 = vmatpush1.bf16.msra.mxu0 %v3614_v29  ;;  %4573 = vst [vmem:[#allocation58_spill] sm:$0xff] %v3637_v31  ;;  %v207_v29 = vld [vmem:[#allocation7 + $0x3e8] sm:$0xff]  ;;  %v3644_v45 = vpack.c.bf16 %v200_v1, %v196_v27  ;;  %v4583_v27 = vld [vmem:[#allocation40_spill] sm:$0xff]  ;;  %v4585_v9 = vld [vmem:[#allocation42_spill] sm:$0xff] }
  0x69   :  { %2581 = vmatpush1.bf16.msra.mxu1 %v3618_v37  ;;  %2519 = vmatprep.subr.bf16.mxu0 %v3620_v40  ;;  %v3640_v37 = vpack.c.bf16 %v198_v22, %v194_v20  ;;  %v3646_v2 = vpack.c.bf16 %v207_v29, %v203_v46  ;;  %4577 = vst [vmem:[#allocation62_spill] sm:$0xff] %v3649_v59  ;;  %v4581_v29 = vld [vmem:[#allocation37_spill] sm:$0xff] }
  0x6a   :  { %2583 = vmatprep.subr.bf16.mxu1 %v3623_v57  ;;  %4575 = vst [vmem:[#allocation60_spill] sm:$0xff] %v3644_v45  ;;  %v208_v57 = vld [vmem:[#allocation7 + $0x3f0] sm:$0xff]  ;;  %v3652_v20 = vpack.c.bf16 %v206_v44, %v202_v54  ;;  %v240_v46 = vsel %vm76_vm0, %v3592_v47, %v229_v19  ;;  %v4580_v19 = vld [vmem:[#allocation36_spill] sm:$0xff]  ;;  %v4584_v1 = vld [vmem:[#allocation41_spill] sm:$0xff] }
  0x6b   :  { %4574 = vst [vmem:[#allocation59_spill] sm:$0xff] %v3640_v37  ;;  %4576 = vst [vmem:[#allocation61_spill] sm:$0xff] %v3646_v2  ;;  %v3656_v22 = vpack.c.bf16 %v208_v57, %v204_v61  ;;  %v4582_v57 = vld [vmem:[#allocation38_spill] sm:$0xff]  ;;  %v4588_v44 = vld [vmem:[#allocation47_spill] sm:$0xff] }
  0x6c   :  { %2521 = vmatpush1.bf16.msra.mxu0 %v3628_v55  ;;  %4578 = vst [vmem:[#allocation63_spill] sm:$0xff] %v3652_v20  ;;  %v4587_v54 = vld [vmem:[#allocation46_spill] sm:$0xff]  ;;  %v4589_v61 = vld [vmem:[#allocation51_spill] sm:$0xff] }
  0x6d   :  { %2585 = vmatpush1.bf16.msra.mxu1 %v3632_v4  ;;  %2523 = vmatprep.subr.bf16.mxu0 %v3634_v6  ;;  %4579 = vst [vmem:[#allocation64_spill] sm:$0xff] %v3656_v22 }
  0x6e   :  { %2587 = vmatprep.subr.bf16.mxu1 %v3637_v31 }
  0x70   :  { %2525 = vmatpush1.bf16.msra.mxu0 %v3640_v37 }
  0x71   :  { %2589 = vmatpush1.bf16.msra.mxu1 %v3644_v45  ;;  %2527 = vmatprep.subr.bf16.mxu0 %v3646_v2 }
  0x72   :  { %2591 = vmatprep.subr.bf16.mxu1 %v3649_v59 }
  0x74   :  { %2529 = vmatpush1.bf16.msra.mxu0 %v3652_v20 }
  0x75   :  { %2593 = vmatpush1.bf16.msra.mxu1 %v3656_v22  ;;  %2595 = vmatprep.subr.bf16.mxu0 %v3447_v3 }
  0x76   :  { %2659 = vmatprep.subr.bf16.mxu1 %v3449_v7 }
  0x77   :  { %307 = vmatmul.mubr.f32.vlgmr.msra.gmra.mrb[0].mxu0 %v240_v46 }
  0x78   :  { %378 = vmatmul.mubr.f32.vlgmr.msra.gmra.mrb[0].mxu1 %v240_v46  ;;  %2597 = vmatpush1.bf16.msra.mxu0 %v3451_v8  ;;  %v4590_v46 = vld [vmem:[#allocation52_spill] sm:$0xff] }
  0x79   :  { %2661 = vmatpush1.bf16.msra.mxu1 %v3454_v12  ;;  %2599 = vmatprep.subr.bf16.mxu0 %v3458_v16 }
  0x7a   :  { %2663 = vmatprep.subr.bf16.mxu1 %v3460_v17 }
  0x7c   :  { %2601 = vmatpush1.bf16.msra.mxu0 %v3463_v21 }
  0x7d   :  { %2665 = vmatpush1.bf16.msra.mxu1 %v3467_v25  ;;  %2603 = vmatprep.subr.bf16.mxu0 %v3469_v26 }
  0x7e   :  { %2667 = vmatprep.subr.bf16.mxu1 %v3471_v30 }
  0x80   :  { %2605 = vmatpush1.bf16.msra.mxu0 %v3474_v34 }
  0x81   :  { %2669 = vmatpush1.bf16.msra.mxu1 %v3478_v38  ;;  %2607 = vmatprep.subr.bf16.mxu0 %v3480_v39 }
  0x82   :  { %2671 = vmatprep.subr.bf16.mxu1 %v3483_v43 }
  0x84   :  { %2609 = vmatpush1.bf16.msra.mxu0 %v3486_v50 }
  0x85   :  { %2673 = vmatpush1.bf16.msra.mxu1 %v3490_v51  ;;  %2611 = vmatprep.subr.bf16.mxu0 %v3492_v52 }
  0x86   :  { %2675 = vmatprep.subr.bf16.mxu1 %v3495_v56 }
  0x88   :  { %2613 = vmatpush1.bf16.msra.mxu0 %v3498_v62 }
  0x89   :  { %2677 = vmatpush1.bf16.msra.mxu1 %v3502_v63  ;;  %2615 = vmatprep.subr.bf16.mxu0 %v3504_v0 }
  0x8a   :  { %2679 = vmatprep.subr.bf16.mxu1 %v3507_v5 }
  0x8c   :  { %2617 = vmatpush1.bf16.msra.mxu0 %v3510_v14 }
  0x8d   :  { %2681 = vmatpush1.bf16.msra.mxu1 %v3514_v15  ;;  %2619 = vmatprep.subr.bf16.mxu0 %v3516_v18 }
  0x8e   :  { %2683 = vmatprep.subr.bf16.mxu1 %v3519_v23 }
  0x90   :  { %2621 = vmatpush1.bf16.msra.mxu0 %v3522_v32 }
  0x91   :  { %2685 = vmatpush1.bf16.msra.mxu1 %v3526_v33  ;;  %2623 = vmatprep.subr.bf16.mxu0 %v3528_v35 }
  0x92   :  { %2687 = vmatprep.subr.bf16.mxu1 %v3531_v41 }
  0x94   :  { %2625 = vmatpush1.bf16.msra.mxu0 %v3534_v48 }
  0x95   :  { %2689 = vmatpush1.bf16.msra.mxu1 %v3538_v49  ;;  %2627 = vmatprep.subr.bf16.mxu0 %v3540_v53 }
  0x96   :  { %2691 = vmatprep.subr.bf16.mxu1 %v3543_v58 }
  0x98   :  { %2629 = vmatpush1.bf16.msra.mxu0 %v3546_v10 }
  0x99   :  { %2693 = vmatpush1.bf16.msra.mxu1 %v3550_v11  ;;  %2631 = vmatprep.subr.bf16.mxu0 %v3552_v13 }
  0x9a   :  { %2695 = vmatprep.subr.bf16.mxu1 %v3555_v24 }
  0x9c   :  { %2633 = vmatpush1.bf16.msra.mxu0 %v3558_v42 }
  0x9d   :  { %2697 = vmatpush1.bf16.msra.mxu1 %v4580_v19  ;;  %2635 = vmatprep.subr.bf16.mxu0 %v4581_v29 }
  0x9e   :  { %2699 = vmatprep.subr.bf16.mxu1 %v4582_v57 }
  0xa0   :  { %2637 = vmatpush1.bf16.msra.mxu0 %v4583_v27  ;;  %v4591_v27 = vld [vmem:[#allocation54_spill] sm:$0xff] }
  0xa1   :  { %2701 = vmatpush1.bf16.msra.mxu1 %v4584_v1  ;;  %2639 = vmatprep.subr.bf16.mxu0 %v4585_v9 }
  0xa2   :  { %2703 = vmatprep.subr.bf16.mxu1 %v4586_v28 }
  0xa4   :  { %2641 = vmatpush1.bf16.msra.mxu0 %v4587_v54 }
  0xa5   :  { %2705 = vmatpush1.bf16.msra.mxu1 %v4588_v44  ;;  %2643 = vmatprep.subr.bf16.mxu0 %v3603_v60 }
  0xa6   :  { %2707 = vmatprep.subr.bf16.mxu1 %v3606_v36 }
  0xa8   :  { %2645 = vmatpush1.bf16.msra.mxu0 %v4589_v61 }
  0xa9   :  { %2709 = vmatpush1.bf16.msra.mxu1 %v4590_v46  ;;  %2647 = vmatprep.subr.bf16.mxu0 %v3620_v40 }
  0xaa   :  { %2711 = vmatprep.subr.bf16.mxu1 %v4591_v27 }
  0xac   :  { %2649 = vmatpush1.bf16.msra.mxu0 %v3628_v55 }
  0xad   :  { %2713 = vmatpush1.bf16.msra.mxu1 %v3632_v4  ;;  %2651 = vmatprep.subr.bf16.mxu0 %v3634_v6  ;;  %v3729_v6 = vstv %s58_s2 }
  0xae   :  { %2715 = vmatprep.subr.bf16.mxu1 %v3637_v31  ;;  %4592 = vst [vmem:[#allocation65_spill] sm:$0xff] %v3729_v6  ;;  %v3731_v31 = vstv %s2463_s28 }
  0xaf   :  { %4593 = vst [vmem:[#allocation66_spill] sm:$0xff] %v3731_v31 }
  0xb0   :  { %2653 = vmatpush1.bf16.msra.mxu0 %v3640_v37  ;;  %v4594_v37 = vld [vmem:[#allocation45_spill] sm:$0xff] }
  0xb1   :  { %2717 = vmatpush1.bf16.msra.mxu1 %v3644_v45  ;;  %2655 = vmatprep.subr.bf16.mxu0 %v3646_v2  ;;  %v430_v45 = vmul.f32 %v3729_v6, %v4594_v37  ;;  %v4595_v2 = vld [vmem:[#allocation44_spill] sm:$0xff]  ;;  %v63_v11 = vmul.f32 %v4594_v37, %v4594_v37 }
  0xb2   :  { %2719 = vmatprep.subr.bf16.mxu1 %v3649_v59  ;;  %v401_v59 = vmul.f32 %v3729_v6, %v4595_v2 }
  0xb4   :  { %2657 = vmatpush1.bf16.msra.mxu0 %v3652_v20  ;;  %v444_v20 = vmul.f32 %v3731_v31, %v4595_v2 }
  0xb5   :  { %2721 = vmatpush1.bf16.msra.mxu1 %v3656_v22  ;;  %2723 = vmatprep.subr.bf16.mxu0 %v3447_v3  ;;  %v416_v3 = vmul.f32 %v3731_v31, %v4594_v37  ;;  %v4596_v22 = vld [vmem:[#allocation39_spill] sm:$0xff] }
  0xb6   :  { %2787 = vmatprep.subr.bf16.mxu1 %v3449_v7  ;;  %v438_v7 = vrot.slane %v430_v45, %v4596_v22  ;;  %v409_v4 = vrot.slane %v401_v59, %v4596_v22  ;;  %v452_v27 = vrot.slane %v444_v20, %v4596_v22 }
  0xb7   :  { %v424_v61 = vrot.slane %v416_v3, %v4596_v22  ;;  %v62_v3 = vmul.f32 %v4595_v2, %v4595_v2 }
  0xb8   :  { %v439_v54 = vcombine.high %v438_v7, %v438_v7  ;;  %v410_v1 = vcombine.high %v409_v4, %v409_v4  ;;  %v453_v45 = vcombine.high %v452_v27, %v452_v27 }
  0xb9   :  { %v425_v19 = vcombine.high %v424_v61, %v424_v61 }
 0x14a   :  { %v308_v55 = vpop.f32.mrb[0].mxu0 }
 0x14b   :  { %v394_v40 = vrot.slane %v308_v55, 2  ;;  %v379_v46 = vpop.f32.mrb[0].mxu1  ;;  %v310_v36 = vpop.f32.mrb[1].mxu0 }
 0x14c   :  { %v386_v60 = vrot.slane %v379_v46, 2  ;;  %v395_v6 = vrot.slane %v310_v36, 2  ;;  %v381_v44 = vpop.f32.mrb[1].mxu1 }
 0x14d   :  { %v398_v28 = vadd.f32 %v394_v40, %v379_v46  ;;  %v387_v9 = vrot.slane %v381_v44, 2 }
 0x14e   :  { %v390_v31 = vsub.f32 %v308_v55, %v386_v60  ;;  %v399_v57 = vadd.f32 %v395_v6, %v381_v44  ;;  %v64_v55 = vadd.f32 %v63_v11, %v62_v3 }
 0x14f   :  { %v442_v29 = vadd.f32 %v438_v7, %v398_v28  ;;  %v391_v59 = vsub.f32 %v310_v36, %v387_v9 }
 0x150   :  { %v413_v42 = vadd.f32 %v409_v4, %v390_v31  ;;  %v443_v20 = vadd.f32 %v439_v54, %v399_v57  ;;  %v72_v31 = vrot.slane %v64_v55, %v4596_v22 }
 0x151   :  { %v456_v24 = vadd.f32 %v452_v27, %v442_v29  ;;  %v414_v13 = vadd.f32 %v410_v1, %v391_v59 }
 0x152   :  { %v428_v10 = vsub.f32 %v413_v42, %v424_v61  ;;  %v457_v40 = vadd.f32 %v453_v45, %v443_v20  ;;  %v73_v27 = vcombine.high %v72_v31, %v72_v31  ;;  %v77_v11 = vsel %vm76_vm0, %v72_v31, 0.0 }
 0x153   :  { %v429_v46 = vsub.f32 %v414_v13, %v425_v19 }
 0x154   :  { %v472_v58 = vcombine.low %v456_v24, %v457_v40 }
 0x155   :  { %v460_v60 = vcombine.low %v428_v10, %v429_v46 }
 0x156   :  { %v479_v7 = vrot.slane %v472_v58, %v4596_v22  ;;  %v78_v58 = vsel %vm76_vm0, %v73_v27, 0.0 }
 0x157   :  { %v467_v36 = vrot.slane %v460_v60, %v4596_v22  ;;  %v79_v9 = vadd.f32 %v78_v58, %v77_v11 }
 0x158   :  { %v481_v4 = vmul.f32 %v479_v7, %v4594_v37 }
 0x159   :  { %v469_v6 = vmul.f32 %v467_v36, %v4595_v2 }
 0x15b   :  { %v482_v29 = vadd.f32 %v481_v4, %v469_v6 }
 0x15d   :  { %v490_v57 = vrot.slane %v482_v29, %v4596_v22 }
 0x15f   :  { %v491_v42 = vcombine.high %v490_v57, %v490_v57  ;;  %v494_v13 = vsel %vm76_vm0, %v490_v57, 0.0 }
 0x161   :  { %v495_v19 = vsel %vm76_vm0, %v491_v42, 0.0 }
 0x162   :  { %v496_v1 = vadd.f32 %v495_v19, %v494_v13  ;;  %v3782_v13 = vrot.slane %v4594_v37, %v4596_v22 }
 0x164   :  { %497 = vadd.xlane.f32.xlu0 %v496_v1  ;;  %v3788_v58 = vcombine.high %v3782_v13, %v3782_v13 }
 0x168   :  { %80 = vadd.xlane.f32.xlu0 %v79_v9 }
 0x1f1   :  { %v498_v28 = vpop.xlane.xlu0 %497 }
 0x1f2   :  { %v499_v54 = vadd.f32 1e-30, %v498_v28  ;;  %v4597_v28 = vld [vmem:[#allocation50_spill] sm:$0xff] }
 0x1f4   :  { %3243 = vrcp.f32 %v499_v54 }
 0x1f5   :  { %v81_v44 = vpop.xlane.xlu0 %80 }
 0x1fe   :  { %v3244_v61 = vpop.eup %3243 }
 0x1ff   :  { %v3759_v45 = vmul.f32 %v3244_v61, %v81_v44 }
 0x201   :  { %v513_v59 = vmul.f32 %v3759_v45, %v428_v10  ;;  %v514_v20 = vmul.f32 %v3759_v45, %v429_v46  ;;  %v527_v3 = vmul.f32 %v3759_v45, %v456_v24  ;;  %v528_v60 = vmul.f32 %v3759_v45, %v457_v40 }
 0x203   :  { %v517_v55 = vcombine.low %v513_v59, %v514_v20  ;;  %v531_v7 = vcombine.low %v527_v3, %v528_v60 }
 0x205   :  { %v524_v36 = vrot.slane %v517_v55, %v4596_v22  ;;  %v538_v4 = vrot.slane %v531_v7, %v4596_v22 }
 0x207   :  { %v3768_v6 = vsub.f32 %v4595_v2, %v524_v36  ;;  %v3771_v31 = vsub.f32 %v4594_v37, %v538_v4  ;;  %v560_v2 = vadd.f32 1e-30, %v81_v44 }
 0x209   :  { %v541_v10 = vmul.f32 %v3768_v6, %v3768_v6  ;;  %v542_v24 = vmul.f32 %v3771_v31, %v3771_v31  ;;  %3245 = vrcp.f32 %v560_v2  ;;  %v4602_v2 = vld [vmem:[#allocation34_spill] sm:$0xff] }
 0x20b   :  { %v543_v46 = vadd.f32 %v542_v24, %v541_v10 }
 0x20d   :  { %v551_v40 = vrot.slane %v543_v46, %v4596_v22 }
 0x20f   :  { %v552_v29 = vcombine.high %v551_v40, %v551_v40  ;;  %v555_v57 = vsel %vm76_vm0, %v551_v40, 0.0 }
 0x211   :  { %v556_v27 = vsel %vm76_vm0, %v552_v29, 0.0  ;;  %v4598_v29 = vld [vmem:[#allocation30_spill] sm:$0xff] }
 0x212   :  { %v557_v42 = vadd.f32 %v556_v27, %v555_v57  ;;  %v4599_v57 = vld [vmem:[#allocation31_spill] sm:$0xff]  ;;  %v4600_v27 = vld [vmem:[#allocation32_spill] sm:$0xff] }
 0x213   :  { %v3246_v19 = vpop.eup %3245 }
 0x214   :  { %558 = vadd.xlane.f32.xlu1 %v557_v42  ;;  %v4601_v42 = vld [vmem:[#allocation33_spill] sm:$0xff] }
 0x2a1   :  { %v3784_v11 = vpop.xlane.xlu1 %558 }
 0x2a2   :  { %v562_v1 = vmul.f32 %v3246_v19, %v3784_v11  ;;  %v4603_v19 = vld [vmem:[#allocation35_spill] sm:$0xff] }
 0x2a4   :  { %v563_v9 = vmul.f32 %v562_v1, %v3592_v47  ;;  %v564_v54 = vmul.f32 %v562_v1, %v4597_v28  ;;  %v577_v44 = vmul.f32 %v562_v1, %v3782_v13  ;;  %v578_v61 = vmul.f32 %v562_v1, %v3788_v58  ;;  %v4604_v1 = vld [vmem:[#allocation36_spill] sm:$0xff] }
 0x2a6   :  { %v567_v59 = vcombine.low %v563_v9, %v564_v54  ;;  %v581_v37 = vcombine.low %v577_v44, %v578_v61  ;;  %v4605_v9 = vld [vmem:[#allocation37_spill] sm:$0xff]  ;;  %v4606_v54 = vld [vmem:[#allocation38_spill] sm:$0xff]  ;;  %v4607_v44 = vld [vmem:[#allocation40_spill] sm:$0xff] }
 0x2a7   :  { %v4608_v61 = vld [vmem:[#allocation41_spill] sm:$0xff] }
 0x2a8   :  { %v574_v20 = vrot.slane %v567_v59, %v4596_v22  ;;  %v588_v3 = vrot.slane %v581_v37, %v4596_v22  ;;  %v4609_v59 = vld [vmem:[#allocation42_spill] sm:$0xff]  ;;  %v4610_v37 = vld [vmem:[#allocation43_spill] sm:$0xff] }
 0x2aa   :  { %v3798_v60 = vadd.f32 %v574_v20, %v3768_v6  ;;  %v3801_v55 = vadd.f32 %v588_v3, %v3771_v31  ;;  %v4611_v20 = vld [vmem:[#allocation46_spill] sm:$0xff]  ;;  %v4612_v3 = vld [vmem:[#allocation47_spill] sm:$0xff] }
 0x2ac   :  { %v3805_v7 = vrot.slane %v3798_v60, %v4596_v22  ;;  %v603_v36 = vcombine.low %v3801_v55, %v3801_v55 }
 0x2ae   :  { %v610_v4 = vrot.slane %v603_v36, %v4596_v22  ;;  %v3812_v10 = vcombine.high %v3805_v7, %v3805_v7  ;;  %v4613_v36 = vld [vmem:[#allocation48_spill] sm:$0xff] }
 0x2b0   :  { %v618_v24 = vcombine.high %v610_v4, %v610_v4  ;;  %v621_v40 = vsel %vm76_vm0, %v3805_v7, %v610_v4  ;;  %v4614_v4 = vld [vmem:[#allocation49_spill] sm:$0xff] }
 0x2b2   :  { %v622_v46 = vsel %vm76_vm0, %v3812_v10, %v618_v24  ;;  %v4615_v24 = vld [vmem:[#allocation51_spill] sm:$0xff] }
 0x2b3   :  { %687 = vmatprep.mubr.f32.mxu0 %v622_v46  ;;  %758 = vmatprep.mubr.f32.mxu1 %v622_v46  ;;  %v4616_v46 = vld [vmem:[#allocation52_spill] sm:$0xff] }
 0x2b4   :  { %688 = vmatmul.mubr.f32.vlgmr.msra.gmra.mrb[2].mxu0 %v621_v40  ;;  %759 = vmatmul.mubr.f32.vlgmr.msra.gmra.mrb[2].mxu1 %v621_v40  ;;  %v4617_v40 = vld [vmem:[#allocation53_spill] sm:$0xff] }
 0x2b5   :  { %2725 = vmatpush1.bf16.msra.mxu0 %v3451_v8  ;;  %2789 = vmatpush1.bf16.msra.mxu1 %v3454_v12 }
 0x2b6   :  { %2727 = vmatprep.subr.bf16.mxu0 %v3458_v16  ;;  %2791 = vmatprep.subr.bf16.mxu1 %v3460_v17 }
 0x2b9   :  { %2729 = vmatpush1.bf16.msra.mxu0 %v3463_v21  ;;  %2793 = vmatpush1.bf16.msra.mxu1 %v3467_v25 }
 0x2ba   :  { %2731 = vmatprep.subr.bf16.mxu0 %v3469_v26  ;;  %2795 = vmatprep.subr.bf16.mxu1 %v3471_v30 }
 0x2bd   :  { %2733 = vmatpush1.bf16.msra.mxu0 %v3474_v34  ;;  %2797 = vmatpush1.bf16.msra.mxu1 %v3478_v38 }
 0x2be   :  { %2735 = vmatprep.subr.bf16.mxu0 %v3480_v39  ;;  %2799 = vmatprep.subr.bf16.mxu1 %v3483_v43 }
 0x2c1   :  { %2737 = vmatpush1.bf16.msra.mxu0 %v3486_v50  ;;  %2801 = vmatpush1.bf16.msra.mxu1 %v3490_v51 }
 0x2c2   :  { %2739 = vmatprep.subr.bf16.mxu0 %v3492_v52  ;;  %2803 = vmatprep.subr.bf16.mxu1 %v3495_v56 }
 0x2c5   :  { %2741 = vmatpush1.bf16.msra.mxu0 %v3498_v62  ;;  %2805 = vmatpush1.bf16.msra.mxu1 %v3502_v63 }
 0x2c6   :  { %2743 = vmatprep.subr.bf16.mxu0 %v3504_v0  ;;  %2807 = vmatprep.subr.bf16.mxu1 %v3507_v5 }
 0x2c9   :  { %2745 = vmatpush1.bf16.msra.mxu0 %v3510_v14  ;;  %2809 = vmatpush1.bf16.msra.mxu1 %v3514_v15 }
 0x2ca   :  { %2747 = vmatprep.subr.bf16.mxu0 %v3516_v18  ;;  %2811 = vmatprep.subr.bf16.mxu1 %v3519_v23 }
 0x2cd   :  { %2749 = vmatpush1.bf16.msra.mxu0 %v3522_v32  ;;  %2813 = vmatpush1.bf16.msra.mxu1 %v3526_v33 }
 0x2ce   :  { %2751 = vmatprep.subr.bf16.mxu0 %v3528_v35  ;;  %2815 = vmatprep.subr.bf16.mxu1 %v3531_v41 }
 0x2d1   :  { %2753 = vmatpush1.bf16.msra.mxu0 %v3534_v48  ;;  %2817 = vmatpush1.bf16.msra.mxu1 %v3538_v49 }
 0x2d2   :  { %2755 = vmatprep.subr.bf16.mxu0 %v3540_v53  ;;  %2819 = vmatprep.subr.bf16.mxu1 %v4598_v29 }
 0x2d5   :  { %2757 = vmatpush1.bf16.msra.mxu0 %v4599_v57  ;;  %2821 = vmatpush1.bf16.msra.mxu1 %v4600_v27 }
 0x2d6   :  { %2759 = vmatprep.subr.bf16.mxu0 %v4601_v42  ;;  %2823 = vmatprep.subr.bf16.mxu1 %v4602_v2 }
 0x2d9   :  { %2761 = vmatpush1.bf16.msra.mxu0 %v4603_v19  ;;  %2825 = vmatpush1.bf16.msra.mxu1 %v4604_v1 }
 0x2da   :  { %2763 = vmatprep.subr.bf16.mxu0 %v4605_v9  ;;  %2827 = vmatprep.subr.bf16.mxu1 %v4606_v54 }
 0x2dd   :  { %2765 = vmatpush1.bf16.msra.mxu0 %v4607_v44  ;;  %2829 = vmatpush1.bf16.msra.mxu1 %v4608_v61  ;;  %v4618_v44 = vld [vmem:[#allocation54_spill] sm:$0xff]  ;;  %v4619_v61 = vld [vmem:[#allocation55_spill] sm:$0xff] }
 0x2de   :  { %2767 = vmatprep.subr.bf16.mxu0 %v4609_v59  ;;  %2831 = vmatprep.subr.bf16.mxu1 %v4610_v37  ;;  %v4620_v59 = vld [vmem:[#allocation56_spill] sm:$0xff]  ;;  %v4621_v37 = vld [vmem:[#allocation57_spill] sm:$0xff] }
 0x2e1   :  { %2769 = vmatpush1.bf16.msra.mxu0 %v4611_v20  ;;  %2833 = vmatpush1.bf16.msra.mxu1 %v4612_v3  ;;  %v4622_v20 = vld [vmem:[#allocation58_spill] sm:$0xff]  ;;  %v4623_v3 = vld [vmem:[#allocation59_spill] sm:$0xff] }
 0x2e2   :  { %2771 = vmatprep.subr.bf16.mxu0 %v4613_v36  ;;  %2835 = vmatprep.subr.bf16.mxu1 %v4614_v4  ;;  %v4624_v36 = vld [vmem:[#allocation60_spill] sm:$0xff]  ;;  %v4625_v4 = vld [vmem:[#allocation61_spill] sm:$0xff] }
 0x2e5   :  { %2773 = vmatpush1.bf16.msra.mxu0 %v4615_v24  ;;  %2837 = vmatpush1.bf16.msra.mxu1 %v4616_v46  ;;  %v4626_v24 = vld [vmem:[#allocation62_spill] sm:$0xff]  ;;  %v4627_v46 = vld [vmem:[#allocation63_spill] sm:$0xff] }
 0x2e6   :  { %2775 = vmatprep.subr.bf16.mxu0 %v4617_v40  ;;  %2839 = vmatprep.subr.bf16.mxu1 %v4618_v44  ;;  %v4628_v40 = vld [vmem:[#allocation64_spill] sm:$0xff]  ;;  %v4629_v44 = vld [vmem:[#allocation17_spill] sm:$0xff] }
 0x2e9   :  { %2777 = vmatpush1.bf16.msra.mxu0 %v4619_v61  ;;  %2841 = vmatpush1.bf16.msra.mxu1 %v4620_v59  ;;  %v4630_v61 = vld [vmem:[#allocation18_spill] sm:$0xff]  ;;  %v4631_v59 = vld [vmem:[#allocation65_spill] sm:$0xff] }
 0x2ea   :  { %2779 = vmatprep.subr.bf16.mxu0 %v4621_v37  ;;  %2843 = vmatprep.subr.bf16.mxu1 %v4622_v20  ;;  %v781_v37 = vmul.f32 %v3798_v60, %v4631_v59  ;;  %v4632_v20 = vld [vmem:[#allocation66_spill] sm:$0xff] }
 0x2ed   :  { %2781 = vmatpush1.bf16.msra.mxu0 %v4623_v3  ;;  %2845 = vmatpush1.bf16.msra.mxu1 %v4624_v36  ;;  %v809_v3 = vmul.f32 %v3801_v55, %v4631_v59  ;;  %v795_v36 = vmul.f32 %v3801_v55, %v4632_v20 }
 0x2ee   :  { %2783 = vmatprep.subr.bf16.mxu0 %v4625_v4  ;;  %2847 = vmatprep.subr.bf16.mxu1 %v4626_v24  ;;  %v823_v24 = vmul.f32 %v3798_v60, %v4632_v20 }
 0x2ef   :  { %v803_v19 = vrot.slane %v795_v36, %v4596_v22 }
 0x2f0   :  { %v831_v59 = vrot.slane %v823_v24, %v4596_v22 }
 0x2f1   :  { %2785 = vmatpush1.bf16.msra.mxu0 %v4627_v46  ;;  %2849 = vmatpush1.bf16.msra.mxu1 %v4628_v40  ;;  %v789_v40 = vrot.slane %v781_v37, %v4596_v22 }
 0x2f2   :  { %2851 = vmatprep.subr.bf16.mxu0 %v4629_v44  ;;  %2915 = vmatprep.subr.bf16.mxu1 %v4630_v61  ;;  %v817_v44 = vrot.slane %v809_v3, %v4596_v22  ;;  %v804_v3 = vcombine.high %v803_v19, %v803_v19  ;;  %v832_v33 = vcombine.high %v831_v59, %v831_v59 }
 0x2f3   :  { %v790_v53 = vcombine.high %v789_v40, %v789_v40 }
 0x2f4   :  { %v818_v49 = vcombine.high %v817_v44, %v817_v44 }
 0x387   :  { %v689_v4 = vpop.f32.mrb[2].mxu0  ;;  %v760_v46 = vpop.f32.mrb[2].mxu1 }
 0x388   :  { %v775_v54 = vrot.slane %v689_v4, 2  ;;  %v767_v61 = vrot.slane %v760_v46, 2  ;;  %v691_v9 = vpop.f32.mrb[3].mxu0  ;;  %v762_v1 = vpop.f32.mrb[3].mxu1 }
 0x389   :  { %v776_v2 = vrot.slane %v691_v9, 2  ;;  %v768_v42 = vrot.slane %v762_v1, 2 }
 0x38a   :  { %v771_v27 = vsub.f32 %v689_v4, %v767_v61  ;;  %v779_v57 = vadd.f32 %v775_v54, %v760_v46 }
 0x38b   :  { %v772_v29 = vsub.f32 %v691_v9, %v768_v42  ;;  %v780_v20 = vadd.f32 %v776_v2, %v762_v1  ;;  %v503_v1 = vmul.f32 %v3759_v45, %v4597_v28  ;;  %v509_v9 = vmul.f32 %v3759_v45, %v3782_v13 }
 0x38c   :  { %v793_v48 = vadd.f32 %v789_v40, %v771_v27  ;;  %v821_v37 = vadd.f32 %v817_v44, %v779_v57  ;;  %v510_v44 = vmul.f32 %v3788_v58, %v3759_v45 }
 0x38d   :  { %v794_v41 = vadd.f32 %v790_v53, %v772_v29  ;;  %v822_v35 = vadd.f32 %v818_v49, %v780_v20 }
 0x38e   :  { %v807_v32 = vsub.f32 %v793_v48, %v803_v19  ;;  %v835_v23 = vadd.f32 %v831_v59, %v821_v37 }
 0x38f   :  { %v808_v18 = vsub.f32 %v794_v41, %v804_v3  ;;  %v836_v36 = vadd.f32 %v832_v33, %v822_v35 }
 0x391   :  { %v839_v15 = vcombine.low %v807_v32, %v808_v18  ;;  %v851_v24 = vcombine.low %v835_v23, %v836_v36 }
 0x393   :  { %v858_v14 = vrot.slane %v851_v24, %v4596_v22  ;;  %v846_v54 = vrot.slane %v839_v15, %v4596_v22  ;;  %v617_v15 = vrot.slane %v3801_v55, %v4596_v22 }
 0x395   :  { %v848_v42 = vmul.f32 %v846_v54, %v3798_v60  ;;  %v860_v2 = vmul.f32 %v858_v14, %v3801_v55  ;;  %v502_v14 = vmul.f32 %v3759_v45, %v3592_v47  ;;  %v885_v19 = vcombine.high %v617_v15, %v617_v15 }
 0x397   :  { %v861_v27 = vadd.f32 %v860_v2, %v848_v42 }
 0x399   :  { %v869_v53 = vrot.slane %v861_v27, %v4596_v22 }
 0x39b   :  { %v870_v29 = vcombine.high %v869_v53, %v869_v53  ;;  %v873_v49 = vsel %vm76_vm0, %v869_v53, 0.0 }
 0x39d   :  { %v874_v48 = vsel %vm76_vm0, %v870_v29, 0.0 }
 0x39e   :  { %v875_v41 = vadd.f32 %v874_v48, %v873_v49 }
 0x3a0   :  { %876 = vadd.xlane.f32.xlu1 %v875_v41 }
 0x42d   :  { %v877_v33 = vpop.xlane.xlu1 %876 }
 0x42e   :  { %v878_v35 = vadd.f32 1e-30, %v877_v33 }
 0x430   :  { %3247 = vrcp.f32 %v878_v35 }
 0x43a   :  { %v3248_v57 = vpop.eup %3247 }
 0x43b   :  { %v880_v60 = vmul.f32 %v3248_v57, %v3784_v11 }
 0x43d   :  { %v892_v61 = vmul.f32 %v880_v60, %v807_v32  ;;  %v893_v59 = vmul.f32 %v880_v60, %v808_v18  ;;  %v906_v20 = vmul.f32 %v880_v60, %v835_v23  ;;  %v907_v55 = vmul.f32 %v880_v60, %v836_v36 }
 0x43e   :  { %v881_v4 = vmul.f32 %v880_v60, %v3805_v7  ;;  %v882_v46 = vmul.f32 %v880_v60, %v3812_v10  ;;  %v888_v40 = vmul.f32 %v880_v60, %v617_v15  ;;  %v889_v47 = vmul.f32 %v885_v19, %v880_v60 }
 0x43f   :  { %v896_v37 = vcombine.low %v892_v61, %v893_v59  ;;  %v910_v3 = vcombine.low %v906_v20, %v907_v55 }
 0x440   :  { %v3914_v24 = vadd.f32 %v881_v4, %v502_v14  ;;  %v3916_v28 = vadd.f32 %v882_v46, %v503_v1  ;;  %v3918_v13 = vadd.f32 %v888_v40, %v509_v9  ;;  %v3920_v54 = vadd.f32 %v889_v47, %v510_v44  ;;  %v4633_v4 = vld [vmem:[#allocation19_spill] sm:$0xff]  ;;  %v4634_v46 = vld [vmem:[#allocation20_spill] sm:$0xff]  ;;  %v4635_v40 = vld [vmem:[#allocation21_spill] sm:$0xff] }
 0x441   :  { %v903_v18 = vrot.slane %v896_v37, %v4596_v22  ;;  %v917_v23 = vrot.slane %v910_v3, %v4596_v22  ;;  %v4636_v47 = vld [vmem:[#allocation22_spill] sm:$0xff]  ;;  %v4637_v37 = vld [vmem:[#allocation23_spill] sm:$0xff]  ;;  %v4638_v3 = vld [vmem:[#allocation24_spill] sm:$0xff] }
 0x443   :  { %v3925_v32 = vsub.f32 %v3768_v6, %v903_v18  ;;  %v3928_v45 = vsub.f32 %v3771_v31, %v917_v23  ;;  %v939_v6 = vadd.f32 1e-30, %v3784_v11  ;;  %v4639_v18 = vld [vmem:[#allocation25_spill] sm:$0xff]  ;;  %v4640_v23 = vld [vmem:[#allocation26_spill] sm:$0xff] }
 0x445   :  { %v920_v58 = vmul.f32 %v3925_v32, %v3925_v32  ;;  %v921_v36 = vmul.f32 %v3928_v45, %v3928_v45  ;;  %3249 = vrcp.f32 %v939_v6  ;;  %v4649_v6 = vld [vmem:[#allocation35_spill] sm:$0xff] }
 0x447   :  { %v922_v42 = vadd.f32 %v921_v36, %v920_v58  ;;  %v4641_v58 = vld [vmem:[#allocation27_spill] sm:$0xff]  ;;  %v4642_v36 = vld [vmem:[#allocation28_spill] sm:$0xff] }
 0x449   :  { %v930_v2 = vrot.slane %v922_v42, %v4596_v22  ;;  %v4643_v42 = vld [vmem:[#allocation29_spill] sm:$0xff] }
 0x44b   :  { %v931_v27 = vcombine.high %v930_v2, %v930_v2  ;;  %v934_v53 = vsel %vm76_vm0, %v930_v2, 0.0  ;;  %v4644_v2 = vld [vmem:[#allocation30_spill] sm:$0xff] }
 0x44d   :  { %v935_v29 = vsel %vm76_vm0, %v931_v27, 0.0  ;;  %v4645_v27 = vld [vmem:[#allocation31_spill] sm:$0xff] }
 0x44e   :  { %v936_v49 = vadd.f32 %v935_v29, %v934_v53  ;;  %v4646_v53 = vld [vmem:[#allocation32_spill] sm:$0xff]  ;;  %v4647_v29 = vld [vmem:[#allocation33_spill] sm:$0xff] }
 0x44f   :  { %v3250_v31 = vpop.eup %3249 }
 0x450   :  { %937 = vadd.xlane.f32.xlu0 %v936_v49  ;;  %v4648_v49 = vld [vmem:[#allocation34_spill] sm:$0xff] }
 0x4dd   :  { %v3938_v48 = vpop.xlane.xlu0 %937 }
 0x4de   :  { %v941_v41 = vmul.f32 %v3250_v31, %v3938_v48  ;;  %v4650_v31 = vld [vmem:[#allocation36_spill] sm:$0xff] }
 0x4e0   :  { %v942_v33 = vmul.f32 %v941_v41, %v3805_v7  ;;  %v943_v35 = vmul.f32 %v941_v41, %v3812_v10  ;;  %v956_v57 = vmul.f32 %v941_v41, %v617_v15  ;;  %v957_v60 = vmul.f32 %v941_v41, %v885_v19  ;;  %v4651_v41 = vld [vmem:[#allocation37_spill] sm:$0xff] }
 0x4e2   :  { %v946_v14 = vcombine.low %v942_v33, %v943_v35  ;;  %v960_v1 = vcombine.low %v956_v57, %v957_v60  ;;  %v4652_v33 = vld [vmem:[#allocation38_spill] sm:$0xff]  ;;  %v4653_v35 = vld [vmem:[#allocation40_spill] sm:$0xff]  ;;  %v4654_v57 = vld [vmem:[#allocation41_spill] sm:$0xff] }
 0x4e3   :  { %v4655_v60 = vld [vmem:[#allocation42_spill] sm:$0xff] }
 0x4e4   :  { %v953_v9 = vrot.slane %v946_v14, %v4596_v22  ;;  %v967_v44 = vrot.slane %v960_v1, %v4596_v22  ;;  %v4656_v14 = vld [vmem:[#allocation43_spill] sm:$0xff]  ;;  %v4657_v1 = vld [vmem:[#allocation46_spill] sm:$0xff] }
 0x4e6   :  { %v3946_v11 = vadd.f32 %v953_v9, %v3925_v32  ;;  %v3949_v61 = vadd.f32 %v967_v44, %v3928_v45  ;;  %v4658_v9 = vld [vmem:[#allocation47_spill] sm:$0xff]  ;;  %v4659_v44 = vld [vmem:[#allocation48_spill] sm:$0xff] }
 0x4e8   :  { %v3953_v59 = vrot.slane %v3946_v11, %v4596_v22  ;;  %v982_v7 = vcombine.low %v3949_v61, %v3949_v61 }
 0x4ea   :  { %v989_v10 = vrot.slane %v982_v7, %v4596_v22  ;;  %v3960_v15 = vcombine.high %v3953_v59, %v3953_v59  ;;  %v4660_v7 = vld [vmem:[#allocation49_spill] sm:$0xff] }
 0x4ec   :  { %v997_v19 = vcombine.high %v989_v10, %v989_v10  ;;  %v1000_v55 = vsel %vm76_vm0, %v3953_v59, %v989_v10  ;;  %v4661_v10 = vld [vmem:[#allocation51_spill] sm:$0xff] }
 0x4ee   :  { %v1001_v20 = vsel %vm76_vm0, %v3960_v15, %v997_v19  ;;  %v4662_v19 = vld [vmem:[#allocation52_spill] sm:$0xff] }
 0x4ef   :  { %1066 = vmatprep.mubr.f32.mxu0 %v1001_v20  ;;  %1137 = vmatprep.mubr.f32.mxu1 %v1001_v20  ;;  %v4663_v20 = vld [vmem:[#allocation53_spill] sm:$0xff] }
 0x4f0   :  { %1067 = vmatmul.mubr.f32.vlgmr.msra.gmra.mrb[4].mxu0 %v1000_v55  ;;  %1138 = vmatmul.mubr.f32.vlgmr.msra.gmra.mrb[4].mxu1 %v1000_v55  ;;  %v4664_v55 = vld [vmem:[#allocation54_spill] sm:$0xff] }
 0x4f1   :  { %2853 = vmatpush1.bf16.msra.mxu0 %v3451_v8  ;;  %2917 = vmatpush1.bf16.msra.mxu1 %v3454_v12 }
 0x4f2   :  { %2855 = vmatprep.subr.bf16.mxu0 %v3458_v16  ;;  %2919 = vmatprep.subr.bf16.mxu1 %v3460_v17 }
 0x4f5   :  { %2857 = vmatpush1.bf16.msra.mxu0 %v3463_v21  ;;  %2921 = vmatpush1.bf16.msra.mxu1 %v3467_v25 }
 0x4f6   :  { %2859 = vmatprep.subr.bf16.mxu0 %v3469_v26  ;;  %2923 = vmatprep.subr.bf16.mxu1 %v3471_v30 }
 0x4f9   :  { %2861 = vmatpush1.bf16.msra.mxu0 %v3474_v34  ;;  %2925 = vmatpush1.bf16.msra.mxu1 %v3478_v38 }
 0x4fa   :  { %2863 = vmatprep.subr.bf16.mxu0 %v3480_v39  ;;  %2927 = vmatprep.subr.bf16.mxu1 %v3483_v43 }
 0x4fd   :  { %2865 = vmatpush1.bf16.msra.mxu0 %v3486_v50  ;;  %2929 = vmatpush1.bf16.msra.mxu1 %v3490_v51 }
 0x4fe   :  { %2867 = vmatprep.subr.bf16.mxu0 %v3492_v52  ;;  %2931 = vmatprep.subr.bf16.mxu1 %v3495_v56 }
 0x501   :  { %2869 = vmatpush1.bf16.msra.mxu0 %v3498_v62  ;;  %2933 = vmatpush1.bf16.msra.mxu1 %v3502_v63 }
 0x502   :  { %2871 = vmatprep.subr.bf16.mxu0 %v3504_v0  ;;  %2935 = vmatprep.subr.bf16.mxu1 %v3507_v5 }
 0x505   :  { %2873 = vmatpush1.bf16.msra.mxu0 %v4633_v4  ;;  %2937 = vmatpush1.bf16.msra.mxu1 %v4634_v46 }
 0x506   :  { %2875 = vmatprep.subr.bf16.mxu0 %v4635_v40  ;;  %2939 = vmatprep.subr.bf16.mxu1 %v4636_v47 }
 0x509   :  { %2877 = vmatpush1.bf16.msra.mxu0 %v4637_v37  ;;  %2941 = vmatpush1.bf16.msra.mxu1 %v4638_v3 }
 0x50a   :  { %2879 = vmatprep.subr.bf16.mxu0 %v4639_v18  ;;  %2943 = vmatprep.subr.bf16.mxu1 %v4640_v23 }
 0x50d   :  { %2881 = vmatpush1.bf16.msra.mxu0 %v4641_v58  ;;  %2945 = vmatpush1.bf16.msra.mxu1 %v4642_v36 }
 0x50e   :  { %2883 = vmatprep.subr.bf16.mxu0 %v4643_v42  ;;  %2947 = vmatprep.subr.bf16.mxu1 %v4644_v2 }
 0x511   :  { %2885 = vmatpush1.bf16.msra.mxu0 %v4645_v27  ;;  %2949 = vmatpush1.bf16.msra.mxu1 %v4646_v53 }
 0x512   :  { %2887 = vmatprep.subr.bf16.mxu0 %v4647_v29  ;;  %2951 = vmatprep.subr.bf16.mxu1 %v4648_v49 }
 0x515   :  { %2889 = vmatpush1.bf16.msra.mxu0 %v4649_v6  ;;  %2953 = vmatpush1.bf16.msra.mxu1 %v4650_v31 }
 0x516   :  { %2891 = vmatprep.subr.bf16.mxu0 %v4651_v41  ;;  %2955 = vmatprep.subr.bf16.mxu1 %v4652_v33 }
 0x519   :  { %2893 = vmatpush1.bf16.msra.mxu0 %v4653_v35  ;;  %2957 = vmatpush1.bf16.msra.mxu1 %v4654_v57  ;;  %v4665_v57 = vld [vmem:[#allocation55_spill] sm:$0xff] }
 0x51a   :  { %2895 = vmatprep.subr.bf16.mxu0 %v4655_v60  ;;  %2959 = vmatprep.subr.bf16.mxu1 %v4656_v14  ;;  %v4666_v60 = vld [vmem:[#allocation56_spill] sm:$0xff]  ;;  %v4667_v14 = vld [vmem:[#allocation57_spill] sm:$0xff] }
 0x51d   :  { %2897 = vmatpush1.bf16.msra.mxu0 %v4657_v1  ;;  %2961 = vmatpush1.bf16.msra.mxu1 %v4658_v9  ;;  %v4668_v1 = vld [vmem:[#allocation58_spill] sm:$0xff]  ;;  %v4669_v9 = vld [vmem:[#allocation59_spill] sm:$0xff] }
 0x51e   :  { %2899 = vmatprep.subr.bf16.mxu0 %v4659_v44  ;;  %2963 = vmatprep.subr.bf16.mxu1 %v4660_v7  ;;  %v4670_v44 = vld [vmem:[#allocation60_spill] sm:$0xff]  ;;  %v4671_v7 = vld [vmem:[#allocation61_spill] sm:$0xff] }
 0x521   :  { %2901 = vmatpush1.bf16.msra.mxu0 %v4661_v10  ;;  %2965 = vmatpush1.bf16.msra.mxu1 %v4662_v19  ;;  %v4672_v10 = vld [vmem:[#allocation62_spill] sm:$0xff]  ;;  %v4673_v19 = vld [vmem:[#allocation63_spill] sm:$0xff] }
 0x522   :  { %2903 = vmatprep.subr.bf16.mxu0 %v4663_v20  ;;  %2967 = vmatprep.subr.bf16.mxu1 %v4664_v55  ;;  %v4674_v20 = vld [vmem:[#allocation64_spill] sm:$0xff]  ;;  %v4675_v55 = vld [vmem:[#allocation17_spill] sm:$0xff] }
 0x525   :  { %2905 = vmatpush1.bf16.msra.mxu0 %v4665_v57  ;;  %2969 = vmatpush1.bf16.msra.mxu1 %v4666_v60  ;;  %v4676_v57 = vld [vmem:[#allocation18_spill] sm:$0xff]  ;;  %v4677_v60 = vld [vmem:[#allocation65_spill] sm:$0xff] }
 0x526   :  { %2907 = vmatprep.subr.bf16.mxu0 %v4667_v14  ;;  %2971 = vmatprep.subr.bf16.mxu1 %v4668_v1  ;;  %v1160_v14 = vmul.f32 %v3946_v11, %v4677_v60  ;;  %v4678_v1 = vld [vmem:[#allocation66_spill] sm:$0xff] }
 0x529   :  { %2909 = vmatpush1.bf16.msra.mxu0 %v4669_v9  ;;  %2973 = vmatpush1.bf16.msra.mxu1 %v4670_v44  ;;  %v1188_v9 = vmul.f32 %v3949_v61, %v4677_v60  ;;  %v1174_v44 = vmul.f32 %v3949_v61, %v4678_v1 }
 0x52a   :  { %2911 = vmatprep.subr.bf16.mxu0 %v4671_v7  ;;  %2975 = vmatprep.subr.bf16.mxu1 %v4672_v10  ;;  %v1202_v10 = vmul.f32 %v3946_v11, %v4678_v1 }
 0x52b   :  { %v1182_v31 = vrot.slane %v1174_v44, %v4596_v22 }
 0x52c   :  { %v1210_v60 = vrot.slane %v1202_v10, %v4596_v22 }
 0x52d   :  { %2913 = vmatpush1.bf16.msra.mxu0 %v4673_v19  ;;  %2977 = vmatpush1.bf16.msra.mxu1 %v4674_v20  ;;  %v1168_v20 = vrot.slane %v1160_v14, %v4596_v22 }
 0x52e   :  { %2979 = vmatprep.subr.bf16.mxu0 %v4675_v55  ;;  %3043 = vmatprep.subr.bf16.mxu1 %v4676_v57  ;;  %v1196_v55 = vrot.slane %v1188_v9, %v4596_v22  ;;  %v1183_v9 = vcombine.high %v1182_v31, %v1182_v31  ;;  %v1211_v18 = vcombine.high %v1210_v60, %v1210_v60 }
 0x52f   :  { %v1169_v2 = vcombine.high %v1168_v20, %v1168_v20 }
 0x530   :  { %v1197_v42 = vcombine.high %v1196_v55, %v1196_v55 }
 0x5c3   :  { %v1068_v7 = vpop.f32.mrb[4].mxu0  ;;  %v1139_v19 = vpop.f32.mrb[4].mxu1 }
 0x5c4   :  { %v1154_v35 = vrot.slane %v1068_v7, 2  ;;  %v1146_v57 = vrot.slane %v1139_v19, 2  ;;  %v1070_v33 = vpop.f32.mrb[5].mxu0  ;;  %v1141_v41 = vpop.f32.mrb[5].mxu1 }
 0x5c5   :  { %v1155_v6 = vrot.slane %v1070_v33, 2  ;;  %v1147_v49 = vrot.slane %v1141_v41, 2 }
 0x5c6   :  { %v1150_v29 = vsub.f32 %v1068_v7, %v1146_v57  ;;  %v1158_v53 = vadd.f32 %v1154_v35, %v1139_v19 }
 0x5c7   :  { %v1151_v27 = vsub.f32 %v1070_v33, %v1147_v49  ;;  %v1159_v1 = vadd.f32 %v1155_v6, %v1141_v41 }
 0x5c8   :  { %v1172_v36 = vadd.f32 %v1168_v20, %v1150_v29  ;;  %v1200_v14 = vadd.f32 %v1196_v55, %v1158_v53 }
 0x5c9   :  { %v1173_v58 = vadd.f32 %v1169_v2, %v1151_v27  ;;  %v1201_v23 = vadd.f32 %v1197_v42, %v1159_v1 }
 0x5ca   :  { %v1186_v3 = vsub.f32 %v1172_v36, %v1182_v31  ;;  %v1214_v37 = vadd.f32 %v1210_v60, %v1200_v14 }
 0x5cb   :  { %v1187_v47 = vsub.f32 %v1173_v58, %v1183_v9  ;;  %v1215_v44 = vadd.f32 %v1211_v18, %v1201_v23 }
 0x5cd   :  { %v1218_v40 = vcombine.low %v1186_v3, %v1187_v47  ;;  %v1230_v10 = vcombine.low %v1214_v37, %v1215_v44 }
 0x5cf   :  { %v1237_v46 = vrot.slane %v1230_v10, %v4596_v22  ;;  %v1225_v35 = vrot.slane %v1218_v40, %v4596_v22  ;;  %v996_v40 = vrot.slane %v3949_v61, %v4596_v22 }
 0x5d1   :  { %v1227_v49 = vmul.f32 %v1225_v35, %v3946_v11  ;;  %v1239_v6 = vmul.f32 %v1237_v46, %v3949_v61  ;;  %v1264_v46 = vcombine.high %v996_v40, %v996_v40 }
 0x5d3   :  { %v1240_v29 = vadd.f32 %v1239_v6, %v1227_v49 }
 0x5d5   :  { %v1248_v2 = vrot.slane %v1240_v29, %v4596_v22 }
 0x5d7   :  { %v1249_v27 = vcombine.high %v1248_v2, %v1248_v2  ;;  %v1252_v42 = vsel %vm76_vm0, %v1248_v2, 0.0 }
 0x5d9   :  { %v1253_v36 = vsel %vm76_vm0, %v1249_v27, 0.0 }
 0x5da   :  { %v1254_v58 = vadd.f32 %v1253_v36, %v1252_v42 }
 0x5dc   :  { %1255 = vadd.xlane.f32.xlu1 %v1254_v58 }
 0x669   :  { %v1256_v18 = vpop.xlane.xlu1 %1255 }
 0x66a   :  { %v1257_v23 = vadd.f32 1e-30, %v1256_v18 }
 0x66c   :  { %3251 = vrcp.f32 %v1257_v23 }
 0x676   :  { %v3252_v53 = vpop.eup %3251 }
 0x677   :  { %v1259_v11 = vmul.f32 %v3252_v53, %v3938_v48 }
 0x679   :  { %v1271_v31 = vmul.f32 %v1259_v11, %v1186_v3  ;;  %v1272_v41 = vmul.f32 %v1259_v11, %v1187_v47  ;;  %v1285_v33 = vmul.f32 %v1259_v11, %v1214_v37  ;;  %v1286_v57 = vmul.f32 %v1259_v11, %v1215_v44 }
 0x67a   :  { %v1260_v60 = vmul.f32 %v1259_v11, %v3953_v59  ;;  %v1261_v1 = vmul.f32 %v1259_v11, %v3960_v15  ;;  %v1267_v7 = vmul.f32 %v1259_v11, %v996_v40  ;;  %v1268_v19 = vmul.f32 %v1264_v46, %v1259_v11 }
 0x67b   :  { %v1275_v20 = vcombine.low %v1271_v31, %v1272_v41  ;;  %v1289_v55 = vcombine.low %v1285_v33, %v1286_v57 }
 0x67c   :  { %v4055_v14 = vadd.f32 %v1260_v60, %v3914_v24  ;;  %v4058_v61 = vadd.f32 %v1261_v1, %v3916_v28  ;;  %v4061_v9 = vadd.f32 %v1267_v7, %v3918_v13  ;;  %v4064_v47 = vadd.f32 %v1268_v19, %v3920_v54  ;;  %v4679_v1 = vld [vmem:[#allocation20_spill] sm:$0xff]  ;;  %v4680_v7 = vld [vmem:[#allocation21_spill] sm:$0xff]  ;;  %v4681_v19 = vld [vmem:[#allocation22_spill] sm:$0xff] }
 0x67d   :  { %v1282_v37 = vrot.slane %v1275_v20, %v4596_v22  ;;  %v1296_v3 = vrot.slane %v1289_v55, %v4596_v22  ;;  %v4682_v20 = vld [vmem:[#allocation23_spill] sm:$0xff]  ;;  %v4683_v55 = vld [vmem:[#allocation24_spill] sm:$0xff] }
 0x67f   :  { %v4069_v44 = vsub.f32 %v3925_v32, %v1282_v37  ;;  %v4072_v10 = vsub.f32 %v3928_v45, %v1296_v3  ;;  %v1318_v32 = vadd.f32 1e-30, %v3938_v48  ;;  %v4684_v37 = vld [vmem:[#allocation25_spill] sm:$0xff]  ;;  %v4685_v3 = vld [vmem:[#allocation26_spill] sm:$0xff] }
 0x681   :  { %v1299_v24 = vmul.f32 %v4069_v44, %v4069_v44  ;;  %v1300_v28 = vmul.f32 %v4072_v10, %v4072_v10  ;;  %3253 = vrcp.f32 %v1318_v32  ;;  %v4694_v32 = vld [vmem:[#allocation35_spill] sm:$0xff] }
 0x683   :  { %v1301_v13 = vadd.f32 %v1300_v28, %v1299_v24  ;;  %v4686_v24 = vld [vmem:[#allocation27_spill] sm:$0xff]  ;;  %v4687_v28 = vld [vmem:[#allocation28_spill] sm:$0xff] }
 0x685   :  { %v1309_v54 = vrot.slane %v1301_v13, %v4596_v22  ;;  %v4688_v13 = vld [vmem:[#allocation29_spill] sm:$0xff] }
 0x687   :  { %v1310_v35 = vcombine.high %v1309_v54, %v1309_v54  ;;  %v1313_v49 = vsel %vm76_vm0, %v1309_v54, 0.0  ;;  %v4689_v54 = vld [vmem:[#allocation30_spill] sm:$0xff] }
 0x689   :  { %v1314_v6 = vsel %vm76_vm0, %v1310_v35, 0.0  ;;  %v4690_v35 = vld [vmem:[#allocation31_spill] sm:$0xff] }
 0x68a   :  { %v1315_v29 = vadd.f32 %v1314_v6, %v1313_v49  ;;  %v4691_v49 = vld [vmem:[#allocation32_spill] sm:$0xff]  ;;  %v4692_v6 = vld [vmem:[#allocation33_spill] sm:$0xff] }
 0x68b   :  { %v3254_v45 = vpop.eup %3253 }
 0x68c   :  { %1316 = vadd.xlane.f32.xlu0 %v1315_v29  ;;  %v4693_v29 = vld [vmem:[#allocation34_spill] sm:$0xff] }
 0x719   :  { %v4082_v2 = vpop.xlane.xlu0 %1316 }
 0x71a   :  { %v1320_v27 = vmul.f32 %v3254_v45, %v4082_v2  ;;  %v4695_v45 = vld [vmem:[#allocation36_spill] sm:$0xff] }
 0x71c   :  { %v1321_v42 = vmul.f32 %v1320_v27, %v3953_v59  ;;  %v1322_v36 = vmul.f32 %v1320_v27, %v3960_v15  ;;  %v1335_v58 = vmul.f32 %v1320_v27, %v996_v40  ;;  %v1336_v18 = vmul.f32 %v1320_v27, %v1264_v46  ;;  %v4696_v27 = vld [vmem:[#allocation37_spill] sm:$0xff] }
 0x71e   :  { %v1325_v23 = vcombine.low %v1321_v42, %v1322_v36  ;;  %v1339_v53 = vcombine.low %v1335_v58, %v1336_v18  ;;  %v4697_v42 = vld [vmem:[#allocation38_spill] sm:$0xff]  ;;  %v4698_v36 = vld [vmem:[#allocation40_spill] sm:$0xff]  ;;  %v4699_v58 = vld [vmem:[#allocation41_spill] sm:$0xff] }
 0x71f   :  { %v4700_v18 = vld [vmem:[#allocation42_spill] sm:$0xff] }
 0x720   :  { %v1332_v11 = vrot.slane %v1325_v23, %v4596_v22  ;;  %v1346_v31 = vrot.slane %v1339_v53, %v4596_v22  ;;  %v4701_v23 = vld [vmem:[#allocation43_spill] sm:$0xff]  ;;  %v4702_v53 = vld [vmem:[#allocation46_spill] sm:$0xff] }
 0x722   :  { %v4090_v48 = vadd.f32 %v1332_v11, %v4069_v44  ;;  %v4093_v41 = vadd.f32 %v1346_v31, %v4072_v10  ;;  %v4703_v11 = vld [vmem:[#allocation47_spill] sm:$0xff]  ;;  %v4704_v31 = vld [vmem:[#allocation48_spill] sm:$0xff] }
 0x724   :  { %v4097_v33 = vrot.slane %v4090_v48, %v4596_v22  ;;  %v1361_v59 = vcombine.low %v4093_v41, %v4093_v41 }
 0x726   :  { %v1368_v15 = vrot.slane %v1361_v59, %v4596_v22  ;;  %v4104_v40 = vcombine.high %v4097_v33, %v4097_v33  ;;  %v4705_v59 = vld [vmem:[#allocation49_spill] sm:$0xff] }
 0x728   :  { %v1376_v46 = vcombine.high %v1368_v15, %v1368_v15  ;;  %v1379_v60 = vsel %vm76_vm0, %v4097_v33, %v1368_v15  ;;  %v4706_v15 = vld [vmem:[#allocation51_spill] sm:$0xff] }
 0x72a   :  { %v1380_v57 = vsel %vm76_vm0, %v4104_v40, %v1376_v46  ;;  %v4707_v46 = vld [vmem:[#allocation52_spill] sm:$0xff] }
 0x72b   :  { %1445 = vmatprep.mubr.f32.mxu0 %v1380_v57  ;;  %1516 = vmatprep.mubr.f32.mxu1 %v1380_v57  ;;  %v4708_v57 = vld [vmem:[#allocation53_spill] sm:$0xff] }
 0x72c   :  { %1446 = vmatmul.mubr.f32.vlgmr.msra.gmra.mrb[6].mxu0 %v1379_v60  ;;  %1517 = vmatmul.mubr.f32.vlgmr.msra.gmra.mrb[6].mxu1 %v1379_v60  ;;  %v4709_v60 = vld [vmem:[#allocation54_spill] sm:$0xff] }
 0x72d   :  { %2981 = vmatpush1.bf16.msra.mxu0 %v3451_v8  ;;  %3045 = vmatpush1.bf16.msra.mxu1 %v3454_v12 }
 0x72e   :  { %2983 = vmatprep.subr.bf16.mxu0 %v3458_v16  ;;  %3047 = vmatprep.subr.bf16.mxu1 %v3460_v17 }
 0x731   :  { %2985 = vmatpush1.bf16.msra.mxu0 %v3463_v21  ;;  %3049 = vmatpush1.bf16.msra.mxu1 %v3467_v25 }
 0x732   :  { %2987 = vmatprep.subr.bf16.mxu0 %v3469_v26  ;;  %3051 = vmatprep.subr.bf16.mxu1 %v3471_v30 }
 0x735   :  { %2989 = vmatpush1.bf16.msra.mxu0 %v3474_v34  ;;  %3053 = vmatpush1.bf16.msra.mxu1 %v3478_v38 }
 0x736   :  { %2991 = vmatprep.subr.bf16.mxu0 %v3480_v39  ;;  %3055 = vmatprep.subr.bf16.mxu1 %v3483_v43 }
 0x739   :  { %2993 = vmatpush1.bf16.msra.mxu0 %v3486_v50  ;;  %3057 = vmatpush1.bf16.msra.mxu1 %v3490_v51 }
 0x73a   :  { %2995 = vmatprep.subr.bf16.mxu0 %v3492_v52  ;;  %3059 = vmatprep.subr.bf16.mxu1 %v3495_v56 }
 0x73d   :  { %2997 = vmatpush1.bf16.msra.mxu0 %v3498_v62  ;;  %3061 = vmatpush1.bf16.msra.mxu1 %v3502_v63 }
 0x73e   :  { %2999 = vmatprep.subr.bf16.mxu0 %v3504_v0  ;;  %3063 = vmatprep.subr.bf16.mxu1 %v3507_v5 }
 0x741   :  { %3001 = vmatpush1.bf16.msra.mxu0 %v4633_v4  ;;  %3065 = vmatpush1.bf16.msra.mxu1 %v4679_v1 }
 0x742   :  { %3003 = vmatprep.subr.bf16.mxu0 %v4680_v7  ;;  %3067 = vmatprep.subr.bf16.mxu1 %v4681_v19 }
 0x745   :  { %3005 = vmatpush1.bf16.msra.mxu0 %v4682_v20  ;;  %3069 = vmatpush1.bf16.msra.mxu1 %v4683_v55 }
 0x746   :  { %3007 = vmatprep.subr.bf16.mxu0 %v4684_v37  ;;  %3071 = vmatprep.subr.bf16.mxu1 %v4685_v3 }
 0x749   :  { %3009 = vmatpush1.bf16.msra.mxu0 %v4686_v24  ;;  %3073 = vmatpush1.bf16.msra.mxu1 %v4687_v28 }
 0x74a   :  { %3011 = vmatprep.subr.bf16.mxu0 %v4688_v13  ;;  %3075 = vmatprep.subr.bf16.mxu1 %v4689_v54 }
 0x74d   :  { %3013 = vmatpush1.bf16.msra.mxu0 %v4690_v35  ;;  %3077 = vmatpush1.bf16.msra.mxu1 %v4691_v49 }
 0x74e   :  { %3015 = vmatprep.subr.bf16.mxu0 %v4692_v6  ;;  %3079 = vmatprep.subr.bf16.mxu1 %v4693_v29 }
 0x751   :  { %3017 = vmatpush1.bf16.msra.mxu0 %v4694_v32  ;;  %3081 = vmatpush1.bf16.msra.mxu1 %v4695_v45 }
 0x752   :  { %3019 = vmatprep.subr.bf16.mxu0 %v4696_v27  ;;  %3083 = vmatprep.subr.bf16.mxu1 %v4697_v42 }
 0x755   :  { %3021 = vmatpush1.bf16.msra.mxu0 %v4698_v36  ;;  %3085 = vmatpush1.bf16.msra.mxu1 %v4699_v58  ;;  %v4710_v58 = vld [vmem:[#allocation55_spill] sm:$0xff] }
 0x756   :  { %3023 = vmatprep.subr.bf16.mxu0 %v4700_v18  ;;  %3087 = vmatprep.subr.bf16.mxu1 %v4701_v23  ;;  %v4711_v18 = vld [vmem:[#allocation56_spill] sm:$0xff]  ;;  %v4712_v23 = vld [vmem:[#allocation57_spill] sm:$0xff] }
 0x759   :  { %3025 = vmatpush1.bf16.msra.mxu0 %v4702_v53  ;;  %3089 = vmatpush1.bf16.msra.mxu1 %v4703_v11  ;;  %v4713_v53 = vld [vmem:[#allocation58_spill] sm:$0xff]  ;;  %v4714_v11 = vld [vmem:[#allocation59_spill] sm:$0xff] }
 0x75a   :  { %3027 = vmatprep.subr.bf16.mxu0 %v4704_v31  ;;  %3091 = vmatprep.subr.bf16.mxu1 %v4705_v59  ;;  %v4715_v31 = vld [vmem:[#allocation60_spill] sm:$0xff]  ;;  %v4716_v59 = vld [vmem:[#allocation61_spill] sm:$0xff] }
 0x75d   :  { %3029 = vmatpush1.bf16.msra.mxu0 %v4706_v15  ;;  %3093 = vmatpush1.bf16.msra.mxu1 %v4707_v46  ;;  %v4717_v15 = vld [vmem:[#allocation62_spill] sm:$0xff]  ;;  %v4718_v46 = vld [vmem:[#allocation63_spill] sm:$0xff] }
 0x75e   :  { %3031 = vmatprep.subr.bf16.mxu0 %v4708_v57  ;;  %3095 = vmatprep.subr.bf16.mxu1 %v4709_v60  ;;  %v4719_v57 = vld [vmem:[#allocation64_spill] sm:$0xff]  ;;  %v4720_v60 = vld [vmem:[#allocation17_spill] sm:$0xff] }
 0x761   :  { %3033 = vmatpush1.bf16.msra.mxu0 %v4710_v58  ;;  %3097 = vmatpush1.bf16.msra.mxu1 %v4711_v18  ;;  %v4721_v58 = vld [vmem:[#allocation18_spill] sm:$0xff]  ;;  %v4722_v18 = vld [vmem:[#allocation65_spill] sm:$0xff] }
 0x762   :  { %3035 = vmatprep.subr.bf16.mxu0 %v4712_v23  ;;  %3099 = vmatprep.subr.bf16.mxu1 %v4713_v53  ;;  %v1539_v23 = vmul.f32 %v4090_v48, %v4722_v18  ;;  %v4723_v53 = vld [vmem:[#allocation66_spill] sm:$0xff] }
 0x765   :  { %3037 = vmatpush1.bf16.msra.mxu0 %v4714_v11  ;;  %3101 = vmatpush1.bf16.msra.mxu1 %v4715_v31  ;;  %v1567_v11 = vmul.f32 %v4093_v41, %v4722_v18  ;;  %v1553_v31 = vmul.f32 %v4093_v41, %v4723_v53 }
 0x766   :  { %3039 = vmatprep.subr.bf16.mxu0 %v4716_v59  ;;  %3103 = vmatprep.subr.bf16.mxu1 %v4717_v15  ;;  %v1581_v15 = vmul.f32 %v4090_v48, %v4723_v53 }
 0x767   :  { %v1561_v45 = vrot.slane %v1553_v31, %v4596_v22 }
 0x768   :  { %v1589_v18 = vrot.slane %v1581_v15, %v4596_v22 }
 0x769   :  { %3041 = vmatpush1.bf16.msra.mxu0 %v4718_v46  ;;  %3105 = vmatpush1.bf16.msra.mxu1 %v4719_v57  ;;  %v1547_v57 = vrot.slane %v1539_v23, %v4596_v22 }
 0x76a   :  { %3107 = vmatprep.subr.bf16.mxu0 %v4720_v60  ;;  %3171 = vmatprep.subr.bf16.mxu1 %v4721_v58  ;;  %v1575_v60 = vrot.slane %v1567_v11, %v4596_v22  ;;  %v1562_v11 = vcombine.high %v1561_v45, %v1561_v45  ;;  %v1590_v37 = vcombine.high %v1589_v18, %v1589_v18 }
 0x76b   :  { %v1548_v54 = vcombine.high %v1547_v57, %v1547_v57 }
 0x76c   :  { %v1576_v13 = vcombine.high %v1575_v60, %v1575_v60 }
 0x7ff   :  { %v1447_v59 = vpop.f32.mrb[6].mxu0  ;;  %v1518_v46 = vpop.f32.mrb[6].mxu1 }
 0x800   :  { %v1533_v36 = vrot.slane %v1447_v59, 2  ;;  %v1525_v58 = vrot.slane %v1518_v46, 2  ;;  %v1449_v42 = vpop.f32.mrb[7].mxu0  ;;  %v1520_v27 = vpop.f32.mrb[7].mxu1 }
 0x801   :  { %v1534_v32 = vrot.slane %v1449_v42, 2  ;;  %v1526_v29 = vrot.slane %v1520_v27, 2 }
 0x802   :  { %v1529_v6 = vsub.f32 %v1447_v59, %v1525_v58  ;;  %v1537_v49 = vadd.f32 %v1533_v36, %v1518_v46 }
 0x803   :  { %v1530_v35 = vsub.f32 %v1449_v42, %v1526_v29  ;;  %v1538_v53 = vadd.f32 %v1534_v32, %v1520_v27 }
 0x804   :  { %v1551_v28 = vadd.f32 %v1547_v57, %v1529_v6  ;;  %v1579_v23 = vadd.f32 %v1575_v60, %v1537_v49 }
 0x805   :  { %v1552_v24 = vadd.f32 %v1548_v54, %v1530_v35  ;;  %v1580_v3 = vadd.f32 %v1576_v13, %v1538_v53 }
 0x806   :  { %v1565_v55 = vsub.f32 %v1551_v28, %v1561_v45  ;;  %v1593_v20 = vadd.f32 %v1589_v18, %v1579_v23 }
 0x807   :  { %v1566_v19 = vsub.f32 %v1552_v24, %v1562_v11  ;;  %v1594_v31 = vadd.f32 %v1590_v37, %v1580_v3 }
 0x809   :  { %v1597_v7 = vcombine.low %v1565_v55, %v1566_v19  ;;  %v1609_v15 = vcombine.low %v1593_v20, %v1594_v31 }
 0x80b   :  { %v1616_v1 = vrot.slane %v1609_v15, %v4596_v22  ;;  %v1604_v36 = vrot.slane %v1597_v7, %v4596_v22  ;;  %v1375_v7 = vrot.slane %v4093_v41, %v4596_v22 }
 0x80d   :  { %v1606_v29 = vmul.f32 %v1604_v36, %v4090_v48  ;;  %v1618_v32 = vmul.f32 %v1616_v1, %v4093_v41  ;;  %v1643_v1 = vcombine.high %v1375_v7, %v1375_v7 }
 0x80f   :  { %v1619_v6 = vadd.f32 %v1618_v32, %v1606_v29 }
 0x811   :  { %v1627_v54 = vrot.slane %v1619_v6, %v4596_v22 }
 0x813   :  { %v1628_v35 = vcombine.high %v1627_v54, %v1627_v54  ;;  %v1631_v13 = vsel %vm76_vm0, %v1627_v54, 0.0 }
 0x815   :  { %v1632_v28 = vsel %vm76_vm0, %v1628_v35, 0.0 }
 0x816   :  { %v1633_v24 = vadd.f32 %v1632_v28, %v1631_v13 }
 0x818   :  { %1634 = vadd.xlane.f32.xlu1 %v1633_v24 }
 0x8a5   :  { %v1635_v37 = vpop.xlane.xlu1 %1634 }
 0x8a6   :  { %v1636_v3 = vadd.f32 1e-30, %v1635_v37 }
 0x8a8   :  { %3255 = vrcp.f32 %v1636_v3 }
 0x8b2   :  { %v3256_v49 = vpop.eup %3255 }
 0x8b3   :  { %v1638_v48 = vmul.f32 %v3256_v49, %v4082_v2 }
 0x8b5   :  { %v1650_v45 = vmul.f32 %v1638_v48, %v1565_v55  ;;  %v1651_v27 = vmul.f32 %v1638_v48, %v1566_v19  ;;  %v1664_v42 = vmul.f32 %v1638_v48, %v1593_v20  ;;  %v1665_v18 = vmul.f32 %v1638_v48, %v1594_v31 }
 0x8b6   :  { %v1639_v53 = vmul.f32 %v1638_v48, %v4097_v33  ;;  %v1640_v59 = vmul.f32 %v1638_v48, %v4104_v40  ;;  %v1646_v46 = vmul.f32 %v1638_v48, %v1375_v7  ;;  %v1647_v57 = vmul.f32 %v1643_v1, %v1638_v48 }
 0x8b7   :  { %v1654_v60 = vcombine.low %v1650_v45, %v1651_v27  ;;  %v1668_v58 = vcombine.low %v1664_v42, %v1665_v18 }
 0x8b8   :  { %v4199_v23 = vadd.f32 %v1639_v53, %v4055_v14  ;;  %v4202_v41 = vadd.f32 %v1640_v59, %v4058_v61  ;;  %v4205_v11 = vadd.f32 %v1646_v46, %v4061_v9  ;;  %v4208_v19 = vadd.f32 %v1647_v57, %v4064_v47  ;;  %v4745_v59 = vld [vmem:[#allocation42_spill] sm:$0xff]  ;;  %v4746_v46 = vld [vmem:[#allocation43_spill] sm:$0xff] }
 0x8b9   :  { %v1661_v20 = vrot.slane %v1654_v60, %v4596_v22  ;;  %v1675_v55 = vrot.slane %v1668_v58, %v4596_v22  ;;  %v4747_v57 = vld [vmem:[#allocation46_spill] sm:$0xff]  ;;  %v4748_v60 = vld [vmem:[#allocation47_spill] sm:$0xff]  ;;  %v4749_v58 = vld [vmem:[#allocation48_spill] sm:$0xff] }
 0x8bb   :  { %v4213_v31 = vsub.f32 %v4069_v44, %v1661_v20  ;;  %v4216_v15 = vsub.f32 %v4072_v10, %v1675_v55  ;;  %v1697_v44 = vadd.f32 1e-30, %v4082_v2  ;;  %v4750_v20 = vld [vmem:[#allocation49_spill] sm:$0xff]  ;;  %v4751_v55 = vld [vmem:[#allocation51_spill] sm:$0xff] }
 0x8bd   :  { %v1678_v14 = vmul.f32 %v4213_v31, %v4213_v31  ;;  %v1679_v61 = vmul.f32 %v4216_v15, %v4216_v15  ;;  %3257 = vrcp.f32 %v1697_v44  ;;  %v4760_v44 = vld [vmem:[#allocation60_spill] sm:$0xff] }
 0x8bf   :  { %v1680_v9 = vadd.f32 %v1679_v61, %v1678_v14  ;;  %v4752_v14 = vld [vmem:[#allocation52_spill] sm:$0xff]  ;;  %v4753_v61 = vld [vmem:[#allocation53_spill] sm:$0xff] }
 0x8c1   :  { %v1688_v47 = vrot.slane %v1680_v9, %v4596_v22  ;;  %v4754_v9 = vld [vmem:[#allocation54_spill] sm:$0xff] }
 0x8c3   :  { %v1689_v36 = vcombine.high %v1688_v47, %v1688_v47  ;;  %v1692_v29 = vsel %vm76_vm0, %v1688_v47, 0.0  ;;  %v4755_v47 = vld [vmem:[#allocation55_spill] sm:$0xff] }
 0x8c5   :  { %v1693_v32 = vsel %vm76_vm0, %v1689_v36, 0.0  ;;  %v4756_v36 = vld [vmem:[#allocation56_spill] sm:$0xff] }
 0x8c6   :  { %v1694_v6 = vadd.f32 %v1693_v32, %v1692_v29  ;;  %v4757_v29 = vld [vmem:[#allocation57_spill] sm:$0xff]  ;;  %v4758_v32 = vld [vmem:[#allocation58_spill] sm:$0xff] }
 0x8c7   :  { %v3258_v10 = vpop.eup %3257 }
 0x8c8   :  { %1695 = vadd.xlane.f32.xlu0 %v1694_v6  ;;  %v4759_v6 = vld [vmem:[#allocation59_spill] sm:$0xff] }
 0x955   :  { %v4226_v54 = vpop.xlane.xlu0 %1695 }
 0x956   :  { %v1699_v35 = vmul.f32 %v3258_v10, %v4226_v54  ;;  %v4761_v10 = vld [vmem:[#allocation61_spill] sm:$0xff] }
 0x958   :  { %v1700_v13 = vmul.f32 %v1699_v35, %v4097_v33  ;;  %v1701_v28 = vmul.f32 %v1699_v35, %v4104_v40  ;;  %v1714_v24 = vmul.f32 %v1699_v35, %v1375_v7  ;;  %v1715_v37 = vmul.f32 %v1699_v35, %v1643_v1  ;;  %v4762_v35 = vld [vmem:[#allocation62_spill] sm:$0xff] }
 0x95a   :  { %v1704_v3 = vcombine.low %v1700_v13, %v1701_v28  ;;  %v1718_v49 = vcombine.low %v1714_v24, %v1715_v37  ;;  %v4763_v13 = vld [vmem:[#allocation63_spill] sm:$0xff]  ;;  %v4764_v28 = vld [vmem:[#allocation64_spill] sm:$0xff]  ;;  %v4765_v24 = vld [vmem:[#allocation65_spill] sm:$0xff] }
 0x95c   :  { %v1711_v48 = vrot.slane %v1704_v3, %v4596_v22  ;;  %v1725_v45 = vrot.slane %v1718_v49, %v4596_v22  ;;  %v4766_v49 = vld [vmem:[#allocation66_spill] sm:$0xff] }
 0x95e   :  { %v4234_v2 = vadd.f32 %v1711_v48, %v4213_v31  ;;  %v4237_v27 = vadd.f32 %v1725_v45, %v4216_v15 }
 0x960   :  { %v4241_v42 = vrot.slane %v4234_v2, %v4596_v22  ;;  %v1740_v33 = vcombine.low %v4237_v27, %v4237_v27  ;;  %v1918_v37 = vmul.f32 %v4234_v2, %v4765_v24  ;;  %v1946_v3 = vmul.f32 %v4237_v27, %v4765_v24 }
 0x961   :  { %v1932_v48 = vmul.f32 %v4237_v27, %v4766_v49  ;;  %v1960_v45 = vmul.f32 %v4234_v2, %v4766_v49 }
 0x962   :  { %v1747_v40 = vrot.slane %v1740_v33, %v4596_v22  ;;  %v4248_v7 = vcombine.high %v4241_v42, %v4241_v42 }
 0x964   :  { %v1755_v1 = vcombine.high %v1747_v40, %v1747_v40  ;;  %v1758_v53 = vsel %vm76_vm0, %v4241_v42, %v1747_v40 }
 0x966   :  { %v1759_v18 = vsel %vm76_vm0, %v4248_v7, %v1755_v1  ;;  %v1926_v1 = vrot.slane %v1918_v37, %v4596_v22 }
 0x967   :  { %1824 = vmatprep.mubr.f32.mxu0 %v1759_v18  ;;  %1895 = vmatprep.mubr.f32.mxu1 %v1759_v18  ;;  %v1954_v18 = vrot.slane %v1946_v3, %v4596_v22 }
 0x968   :  { %1825 = vmatmul.mubr.f32.vlgmr.msra.gmra.mrb[8].mxu0 %v1758_v53  ;;  %1896 = vmatmul.mubr.f32.vlgmr.msra.gmra.mrb[8].mxu1 %v1758_v53 }
 0x969   :  { %3109 = vmatpush1.bf16.msra.mxu0 %v3451_v8  ;;  %3173 = vmatpush1.bf16.msra.mxu1 %v3454_v12  ;;  %v4724_v8 = vld [vmem:[#allocation20_spill] sm:$0xff]  ;;  %v4725_v12 = vld [vmem:[#allocation21_spill] sm:$0xff] }
 0x96a   :  { %3111 = vmatprep.subr.bf16.mxu0 %v3458_v16  ;;  %3175 = vmatprep.subr.bf16.mxu1 %v3460_v17  ;;  %v4726_v16 = vld [vmem:[#allocation22_spill] sm:$0xff]  ;;  %v4727_v17 = vld [vmem:[#allocation23_spill] sm:$0xff] }
 0x96d   :  { %3113 = vmatpush1.bf16.msra.mxu0 %v3463_v21  ;;  %3177 = vmatpush1.bf16.msra.mxu1 %v3467_v25  ;;  %v4728_v21 = vld [vmem:[#allocation24_spill] sm:$0xff]  ;;  %v4729_v25 = vld [vmem:[#allocation25_spill] sm:$0xff] }
 0x96e   :  { %3115 = vmatprep.subr.bf16.mxu0 %v3469_v26  ;;  %3179 = vmatprep.subr.bf16.mxu1 %v3471_v30  ;;  %v4730_v26 = vld [vmem:[#allocation26_spill] sm:$0xff]  ;;  %v4731_v30 = vld [vmem:[#allocation27_spill] sm:$0xff] }
 0x971   :  { %3117 = vmatpush1.bf16.msra.mxu0 %v3474_v34  ;;  %3181 = vmatpush1.bf16.msra.mxu1 %v3478_v38  ;;  %v4732_v34 = vld [vmem:[#allocation28_spill] sm:$0xff]  ;;  %v4733_v38 = vld [vmem:[#allocation29_spill] sm:$0xff] }
 0x972   :  { %3119 = vmatprep.subr.bf16.mxu0 %v3480_v39  ;;  %3183 = vmatprep.subr.bf16.mxu1 %v3483_v43  ;;  %v4734_v39 = vld [vmem:[#allocation30_spill] sm:$0xff]  ;;  %v4735_v43 = vld [vmem:[#allocation31_spill] sm:$0xff] }
 0x975   :  { %3121 = vmatpush1.bf16.msra.mxu0 %v3486_v50  ;;  %3185 = vmatpush1.bf16.msra.mxu1 %v3490_v51  ;;  %v4736_v50 = vld [vmem:[#allocation32_spill] sm:$0xff]  ;;  %v4737_v51 = vld [vmem:[#allocation33_spill] sm:$0xff] }
 0x976   :  { %3123 = vmatprep.subr.bf16.mxu0 %v3492_v52  ;;  %3187 = vmatprep.subr.bf16.mxu1 %v3495_v56  ;;  %v4738_v52 = vld [vmem:[#allocation34_spill] sm:$0xff]  ;;  %v4739_v56 = vld [vmem:[#allocation35_spill] sm:$0xff] }
 0x979   :  { %3125 = vmatpush1.bf16.msra.mxu0 %v3498_v62  ;;  %3189 = vmatpush1.bf16.msra.mxu1 %v3502_v63  ;;  %v4740_v62 = vld [vmem:[#allocation36_spill] sm:$0xff]  ;;  %v4741_v63 = vld [vmem:[#allocation37_spill] sm:$0xff] }
 0x97a   :  { %3127 = vmatprep.subr.bf16.mxu0 %v3504_v0  ;;  %3191 = vmatprep.subr.bf16.mxu1 %v3507_v5  ;;  %v4742_v0 = vld [vmem:[#allocation38_spill] sm:$0xff]  ;;  %v4743_v5 = vld [vmem:[#allocation40_spill] sm:$0xff] }
 0x97d   :  { %3129 = vmatpush1.bf16.msra.mxu0 %v4633_v4  ;;  %3193 = vmatpush1.bf16.msra.mxu1 %v4724_v8  ;;  %v4744_v4 = vld [vmem:[#allocation41_spill] sm:$0xff] }
 0x97e   :  { %3131 = vmatprep.subr.bf16.mxu0 %v4725_v12  ;;  %3195 = vmatprep.subr.bf16.mxu1 %v4726_v16 }
 0x981   :  { %3133 = vmatpush1.bf16.msra.mxu0 %v4727_v17  ;;  %3197 = vmatpush1.bf16.msra.mxu1 %v4728_v21  ;;  %v1940_v17 = vrot.slane %v1932_v48, %v4596_v22  ;;  %v1968_v21 = vrot.slane %v1960_v45, %v4596_v22 }
 0x982   :  { %3135 = vmatprep.subr.bf16.mxu0 %v4729_v25  ;;  %3199 = vmatprep.subr.bf16.mxu1 %v4730_v26 }
 0x985   :  { %3137 = vmatpush1.bf16.msra.mxu0 %v4731_v30  ;;  %3201 = vmatpush1.bf16.msra.mxu1 %v4732_v34 }
 0x986   :  { %3139 = vmatprep.subr.bf16.mxu0 %v4733_v38  ;;  %3203 = vmatprep.subr.bf16.mxu1 %v4734_v39 }
 0x989   :  { %3141 = vmatpush1.bf16.msra.mxu0 %v4735_v43  ;;  %3205 = vmatpush1.bf16.msra.mxu1 %v4736_v50  ;;  %v1927_v43 = vcombine.high %v1926_v1, %v1926_v1  ;;  %v1955_v50 = vcombine.high %v1954_v18, %v1954_v18 }
 0x98a   :  { %3143 = vmatprep.subr.bf16.mxu0 %v4737_v51  ;;  %3207 = vmatprep.subr.bf16.mxu1 %v4738_v52 }
 0x98d   :  { %3145 = vmatpush1.bf16.msra.mxu0 %v4739_v56  ;;  %3209 = vmatpush1.bf16.msra.mxu1 %v4740_v62  ;;  %v1941_v62 = vcombine.high %v1940_v17, %v1940_v17 }
 0x98e   :  { %3147 = vmatprep.subr.bf16.mxu0 %v4741_v63  ;;  %3211 = vmatprep.subr.bf16.mxu1 %v4742_v0  ;;  %v1969_v0 = vcombine.high %v1968_v21, %v1968_v21 }
 0x991   :  { %3149 = vmatpush1.bf16.msra.mxu0 %v4743_v5  ;;  %3213 = vmatpush1.bf16.msra.mxu1 %v4744_v4 }
 0x992   :  { %3151 = vmatprep.subr.bf16.mxu0 %v4745_v59  ;;  %3215 = vmatprep.subr.bf16.mxu1 %v4746_v46 }
 0x995   :  { %3153 = vmatpush1.bf16.msra.mxu0 %v4747_v57  ;;  %3217 = vmatpush1.bf16.msra.mxu1 %v4748_v60 }
 0x996   :  { %3155 = vmatprep.subr.bf16.mxu0 %v4749_v58  ;;  %3219 = vmatprep.subr.bf16.mxu1 %v4750_v20 }
 0x999   :  { %3157 = vmatpush1.bf16.msra.mxu0 %v4751_v55  ;;  %3221 = vmatpush1.bf16.msra.mxu1 %v4752_v14 }
 0x99a   :  { %3159 = vmatprep.subr.bf16.mxu0 %v4753_v61  ;;  %3223 = vmatprep.subr.bf16.mxu1 %v4754_v9 }
 0x99d   :  { %3161 = vmatpush1.bf16.msra.mxu0 %v4755_v47  ;;  %3225 = vmatpush1.bf16.msra.mxu1 %v4756_v36 }
 0x99e   :  { %3163 = vmatprep.subr.bf16.mxu0 %v4757_v29  ;;  %3227 = vmatprep.subr.bf16.mxu1 %v4758_v32 }
 0x9a1   :  { %3165 = vmatpush1.bf16.msra.mxu0 %v4759_v6  ;;  %3229 = vmatpush1.bf16.msra.mxu1 %v4760_v44 }
 0x9a2   :  { %3167 = vmatprep.subr.bf16.mxu0 %v4761_v10  ;;  %3231 = vmatprep.subr.bf16.mxu1 %v4762_v35  ;;  %v1754_v10 = vrot.slane %v4237_v27, %v4596_v22 }
 0x9a5   :  { %3169 = vmatpush1.bf16.msra.mxu0 %v4763_v13  ;;  %3233 = vmatpush1.bf16.msra.mxu1 %v4764_v28  ;;  %v2022_v13 = vcombine.high %v1754_v10, %v1754_v10 }
 0xa3b   :  { %v1826_v33 = vpop.f32.mrb[8].mxu0  ;;  %v1897_v40 = vpop.f32.mrb[8].mxu1 }
 0xa3c   :  { %v1912_v53 = vrot.slane %v1826_v33, 2  ;;  %v1904_v8 = vrot.slane %v1897_v40, 2  ;;  %v1828_v12 = vpop.f32.mrb[9].mxu0  ;;  %v1899_v16 = vpop.f32.mrb[9].mxu1 }
 0xa3d   :  { %v1913_v25 = vrot.slane %v1828_v12, 2  ;;  %v1905_v26 = vrot.slane %v1899_v16, 2 }
 0xa3e   :  { %v1908_v30 = vsub.f32 %v1826_v33, %v1904_v8  ;;  %v1916_v34 = vadd.f32 %v1912_v53, %v1897_v40 }
 0xa3f   :  { %v1909_v38 = vsub.f32 %v1828_v12, %v1905_v26  ;;  %v1917_v39 = vadd.f32 %v1913_v25, %v1899_v16 }
 0xa40   :  { %v1930_v51 = vadd.f32 %v1926_v1, %v1908_v30  ;;  %v1958_v52 = vadd.f32 %v1954_v18, %v1916_v34 }
 0xa41   :  { %v1931_v56 = vadd.f32 %v1927_v43, %v1909_v38  ;;  %v1959_v63 = vadd.f32 %v1955_v50, %v1917_v39  ;;  %v2076_v43 = vadd.f32 1e-30, %v4226_v54 }
 0xa42   :  { %v1944_v5 = vsub.f32 %v1930_v51, %v1940_v17  ;;  %v1972_v4 = vadd.f32 %v1968_v21, %v1958_v52 }
 0xa43   :  { %v1945_v59 = vsub.f32 %v1931_v56, %v1941_v62  ;;  %v1973_v46 = vadd.f32 %v1969_v0, %v1959_v63 }
 0xa45   :  { %v1976_v57 = vcombine.low %v1944_v5, %v1945_v59  ;;  %v1988_v60 = vcombine.low %v1972_v4, %v1973_v46 }
 0xa47   :  { %v1995_v58 = vrot.slane %v1988_v60, %v4596_v22  ;;  %v1983_v20 = vrot.slane %v1976_v57, %v4596_v22 }
 0xa49   :  { %v1985_v55 = vmul.f32 %v1983_v20, %v4234_v2  ;;  %v1997_v14 = vmul.f32 %v1995_v58, %v4237_v27 }
 0xa4b   :  { %v1998_v61 = vadd.f32 %v1997_v14, %v1985_v55 }
 0xa4d   :  { %v2006_v9 = vrot.slane %v1998_v61, %v4596_v22 }
 0xa4f   :  { %v2007_v47 = vcombine.high %v2006_v9, %v2006_v9  ;;  %v2010_v36 = vsel %vm76_vm0, %v2006_v9, 0.0 }
 0xa51   :  { %v2011_v29 = vsel %vm76_vm0, %v2007_v47, 0.0 }
 0xa52   :  { %v2012_v32 = vadd.f32 %v2011_v29, %v2010_v36 }
 0xa54   :  { %2013 = vadd.xlane.f32.xlu1 %v2012_v32 }
 0xae1   :  { %v2014_v6 = vpop.xlane.xlu1 %2013 }
 0xae2   :  { %v2015_v44 = vadd.f32 1e-30, %v2014_v6 }
 0xae4   :  { %3259 = vrcp.f32 %v2015_v44 }
 0xae5   :  { %3261 = vrcp.f32 %v2076_v43 }
 0xaee   :  { %v3260_v35 = vpop.eup %3259 }
 0xaef   :  { %v2017_v2 = vmul.f32 %v3260_v35, %v4226_v54  ;;  %v3262_v50 = vpop.eup %3261 }
 0xaf1   :  { %v2029_v28 = vmul.f32 %v2017_v2, %v1944_v5  ;;  %v2030_v37 = vmul.f32 %v2017_v2, %v1945_v59  ;;  %v2043_v3 = vmul.f32 %v2017_v2, %v1972_v4  ;;  %v2044_v48 = vmul.f32 %v2017_v2, %v1973_v46 }
 0xaf2   :  { %v2018_v45 = vmul.f32 %v2017_v2, %v4241_v42  ;;  %v2019_v33 = vmul.f32 %v2017_v2, %v4248_v7  ;;  %v2025_v40 = vmul.f32 %v2017_v2, %v1754_v10  ;;  %v2026_v1 = vmul.f32 %v2022_v13, %v2017_v2 }
 0xaf3   :  { %v2033_v18 = vcombine.low %v2029_v28, %v2030_v37  ;;  %v2047_v53 = vcombine.low %v2043_v3, %v2044_v48 }
 0xaf4   :  { %v4341_v8 = vadd.f32 %v2018_v45, %v4199_v23  ;;  %v4344_v27 = vadd.f32 %v2019_v33, %v4202_v41  ;;  %v4347_v12 = vadd.f32 %v2025_v40, %v4205_v11  ;;  %v4350_v16 = vadd.f32 %v2026_v1, %v4208_v19 }
 0xaf5   :  { %v2040_v17 = vrot.slane %v2033_v18, %v4596_v22  ;;  %v2054_v21 = vrot.slane %v2047_v53, %v4596_v22 }
 0xaf7   :  { %v2042_v25 = vsub.f32 %v4213_v31, %v2040_v17  ;;  %v2056_v26 = vsub.f32 %v4216_v15, %v2054_v21 }
 0xaf9   :  { %v2057_v30 = vmul.f32 %v2042_v25, %v2042_v25  ;;  %v2058_v23 = vmul.f32 %v2056_v26, %v2056_v26 }
 0xafb   :  { %v2059_v34 = vadd.f32 %v2058_v23, %v2057_v30 }
 0xafd   :  { %v2067_v41 = vrot.slane %v2059_v34, %v4596_v22 }
 0xaff   :  { %v2068_v38 = vcombine.high %v2067_v41, %v2067_v41  ;;  %v2071_v11 = vsel %vm76_vm0, %v2067_v41, 0.0 }
 0xb01   :  { %v2072_v39 = vsel %vm76_vm0, %v2068_v38, 0.0 }
 0xb02   :  { %v2073_v19 = vadd.f32 %v2072_v39, %v2071_v11 }
 0xb04   :  { %2074 = vadd.xlane.f32.xlu0 %v2073_v19 }
 0xb91   :  { %v4360_v51 = vpop.xlane.xlu0 %2074 }
 0xb92   :  { %v2078_v31 = vmul.f32 %v3262_v50, %v4360_v51 }
 0xb94   :  { %v2079_v15 = vmul.f32 %v2078_v31, %v4241_v42  ;;  %v2080_v52 = vmul.f32 %v2078_v31, %v4248_v7  ;;  %v2093_v56 = vmul.f32 %v2078_v31, %v1754_v10  ;;  %v2094_v62 = vmul.f32 %v2078_v31, %v2022_v13 }
 0xb96   :  { %v2083_v63 = vcombine.low %v2079_v15, %v2080_v52  ;;  %v2097_v0 = vcombine.low %v2093_v56, %v2094_v62 }
 0xb98   :  { %v2090_v5 = vrot.slane %v2083_v63, %v4596_v22  ;;  %v2104_v4 = vrot.slane %v2097_v0, %v4596_v22 }
 0xb9a   :  { %v2092_v59 = vadd.f32 %v2090_v5, %v2042_v25  ;;  %v2106_v54 = vadd.f32 %v2104_v4, %v2056_v26 }
 0xb9c   :  { %v4368_v46 = vrot.slane %v2092_v59, %v4596_v22  ;;  %v2119_v57 = vcombine.low %v2106_v54, %v2106_v54  ;;  %v2297_v55 = vmul.f32 %v2092_v59, %v4765_v24  ;;  %v2325_v14 = vmul.f32 %v2106_v54, %v4765_v24 }
 0xb9d   :  { %v2311_v61 = vmul.f32 %v2106_v54, %v4766_v49  ;;  %v2339_v9 = vmul.f32 %v2092_v59, %v4766_v49  ;;  %v2133_v0 = vrot.slane %v2106_v54, %v4596_v22 }
 0xb9e   :  { %v2126_v60 = vrot.slane %v2119_v57, %v4596_v22  ;;  %v2115_v42 = vcombine.high %v4368_v46, %v4368_v46  ;;  %v2305_v29 = vrot.slane %v2297_v55, %v4596_v22  ;;  %v2333_v32 = vrot.slane %v2325_v14, %v4596_v22 }
 0xb9f   :  { %v2319_v2 = vrot.slane %v2311_v61, %v4596_v22  ;;  %v2347_v13 = vrot.slane %v2339_v9, %v4596_v22 }
 0xba0   :  { %v2134_v7 = vcombine.high %v2126_v60, %v2126_v60  ;;  %v2137_v20 = vsel %vm76_vm0, %v4368_v46, %v2126_v60  ;;  %v2306_v45 = vcombine.high %v2305_v29, %v2305_v29  ;;  %v2334_v33 = vcombine.high %v2333_v32, %v2333_v32 }
 0xba1   :  { %v2320_v53 = vcombine.high %v2319_v2, %v2319_v2  ;;  %v2348_v21 = vcombine.high %v2347_v13, %v2347_v13 }
 0xba2   :  { %v2138_v58 = vsel %vm76_vm0, %v2115_v42, %v2134_v7 }
 0xba3   :  { %2203 = vmatprep.mubr.f32.mxu0 %v2138_v58  ;;  %2274 = vmatprep.mubr.f32.mxu1 %v2138_v58 }
 0xba4   :  { %2204 = vmatmul.mubr.f32.vlgmr.msra.gmra.mrb[10].mxu0 %v2137_v20  ;;  %2275 = vmatmul.mubr.f32.vlgmr.msra.gmra.mrb[10].mxu1 %v2137_v20 }
 0xc77   :  { %v2205_v47 = vpop.f32.mrb[10].mxu0  ;;  %v2276_v36 = vpop.f32.mrb[10].mxu1 }
 0xc78   :  { %v2291_v6 = vrot.slane %v2205_v47, 2  ;;  %v2283_v44 = vrot.slane %v2276_v36, 2  ;;  %v2207_v10 = vpop.f32.mrb[11].mxu0  ;;  %v2278_v35 = vpop.f32.mrb[11].mxu1 }
 0xc79   :  { %v2292_v28 = vrot.slane %v2207_v10, 2  ;;  %v2284_v24 = vrot.slane %v2278_v35, 2 }
 0xc7a   :  { %v2287_v37 = vsub.f32 %v2205_v47, %v2283_v44  ;;  %v2295_v3 = vadd.f32 %v2291_v6, %v2276_v36 }
 0xc7b   :  { %v2288_v48 = vsub.f32 %v2207_v10, %v2284_v24  ;;  %v2296_v49 = vadd.f32 %v2292_v28, %v2278_v35 }
 0xc7c   :  { %v2309_v40 = vadd.f32 %v2305_v29, %v2287_v37  ;;  %v2337_v1 = vadd.f32 %v2333_v32, %v2295_v3 }
 0xc7d   :  { %v2310_v18 = vadd.f32 %v2306_v45, %v2288_v48  ;;  %v2338_v17 = vadd.f32 %v2334_v33, %v2296_v49 }
 0xc7e   :  { %v2323_v25 = vsub.f32 %v2309_v40, %v2319_v2  ;;  %v2351_v26 = vadd.f32 %v2347_v13, %v2337_v1 }
 0xc7f   :  { %v2324_v30 = vsub.f32 %v2310_v18, %v2320_v53  ;;  %v2352_v23 = vadd.f32 %v2348_v21, %v2338_v17 }
 0xc81   :  { %v2355_v34 = vcombine.low %v2323_v25, %v2324_v30  ;;  %v2367_v41 = vcombine.low %v2351_v26, %v2352_v23 }
 0xc83   :  { %v2374_v38 = vrot.slane %v2367_v41, %v4596_v22  ;;  %v2362_v11 = vrot.slane %v2355_v34, %v4596_v22 }
 0xc85   :  { %v2364_v39 = vmul.f32 %v2362_v11, %v2092_v59  ;;  %v2376_v19 = vmul.f32 %v2374_v38, %v2106_v54  ;;  %v2401_v59 = vcombine.high %v2133_v0, %v2133_v0 }
 0xc87   :  { %v2377_v43 = vadd.f32 %v2376_v19, %v2364_v39 }
 0xc89   :  { %v2385_v50 = vrot.slane %v2377_v43, %v4596_v22 }
 0xc8b   :  { %v2386_v31 = vcombine.high %v2385_v50, %v2385_v50  ;;  %v2389_v15 = vsel %vm76_vm0, %v2385_v50, 0.0 }
 0xc8d   :  { %v2390_v52 = vsel %vm76_vm0, %v2386_v31, 0.0 }
 0xc8e   :  { %v2391_v56 = vadd.f32 %v2390_v52, %v2389_v15 }
 0xc90   :  { %2392 = vadd.xlane.f32.xlu1 %v2391_v56 }
 0xd1d   :  { %v2393_v62 = vpop.xlane.xlu1 %2392 }
 0xd1e   :  { %v2394_v63 = vadd.f32 1e-30, %v2393_v62 }
 0xd20   :  { %3263 = vrcp.f32 %v2394_v63 }
 0xd2a   :  { %v3264_v5 = vpop.eup %3263 }
 0xd2b   :  { %v2396_v4 = vmul.f32 %v3264_v5, %v4360_v51 }
 0xd2d   :  { %v2397_v57 = vmul.f32 %v2396_v4, %v4368_v46  ;;  %v2398_v60 = vmul.f32 %v2396_v4, %v2115_v42  ;;  %v2404_v7 = vmul.f32 %v2396_v4, %v2133_v0  ;;  %v2405_v58 = vmul.f32 %v2401_v59, %v2396_v4 }
 0xd2f   :  { %v2399_v20 = vadd.f32 %v2397_v57, %v4341_v8  ;;  %v2400_v55 = vadd.f32 %v2398_v60, %v4344_v27  ;;  %v2406_v14 = vadd.f32 %v2404_v7, %v4347_v12  ;;  %v2407_v61 = vadd.f32 %v2405_v58, %v4350_v16 }
 0xd31   :  { %v2410_v22 = vcombine.low %v2399_v20, %v2400_v55  ;;  %v2422_v51 = vcombine.low %v2406_v14, %v2407_v61 }
 0xd33   :  { %2464 = vst.sshfl [vmem:[#allocation9] sm:$0x33 pattern:$0x76325410] %v2410_v22 }
 0xd34   :  { %2465 = vst.sshfl [vmem:[#allocation10] sm:$0x33 pattern:$0x76325410] %v2422_v51 }
 0xd35   :  { %3330 = shalt.err (!%p3327_p9)
}
 0xd36   :  { %s3331_s11 = scalar_lea.hbm %s4424_s4, 64 }
 0xd37   :  { %p3332_p10 = scmp.ne.s32.totalorder %s4424_s4, %s3331_s11  ;;  %p3335_p11 = scmp.lt.u32.totalorder %s3331_s11, %s4424_s4 }
 0xd39   :  { %p3337_p12 = pnand %p3335_p11, %p3332_p10 }
 0xd3b   :  { %3340 = shalt.err (!%p3337_p12)
}
 0xd3c   :  { %2441 = dma.vmem_to_hbm [thread:$0]  %s2439_s30, 64, %s4424_s4, [#allocation4]  }
 0xd3d   :  { %s3341_s17 = scalar_lea.vmem %s2449_s7, 64  ;;  %p3346_p0 = scmp.lt.s32.totalorder %s2449_s7, %s2449_s7 }
 0xd3e   :  { %p3342_p13 = scmp.ne.s32.totalorder %s2449_s7, %s3341_s17  ;;  %p3347_p1 = scmp.lt.s32.totalorder %s3341_s17, %s3341_s17 }
 0xd40   :  { %p3348_p2 = por %p3347_p1, %p3346_p0 }
 0xd42   :  { %p3349_p3 = pnand %p3348_p2, %p3342_p13 }
 0xd44   :  { %3352 = shalt.err (!%p3349_p3)
}
 0xd45   :  { %s3353_s20 = scalar_lea.hbm %s4425_s5, 64 }
 0xd46   :  { %p3354_p4 = scmp.ne.s32.totalorder %s4425_s5, %s3353_s20  ;;  %p3357_p5 = scmp.lt.u32.totalorder %s3353_s20, %s4425_s5 }
 0xd48   :  { %p3359_p6 = pnand %p3357_p5, %p3354_p4 }
 0xd4a   :  { %3362 = shalt.err (!%p3359_p6)
}
 0xd4b   :  { %2451 = dma.vmem_to_hbm [thread:$0]  %s2449_s7, 64, %s4425_s5, [#allocation11]  }
 0xd4c   :  { %3369 = dma.done.wait [#allocation4], 64  }
 0xd4d   :  { %3370 = vsyncadd [#allocation4], 4294967232 }
 0xd4e   :  { %3371 = dma.done.wait [#allocation11], 64  }
 0xd4f   :  { %3372 = vsyncadd [#allocation11], 4294967232 }
 0xd50   :  { %2458 = vsyncpa [#allocation3], 1 }
 0xd51   :  { %2459 = vsyncpa [#allocation8], 1 }
 0xd52   :  { %2460 = vsyncpa [#allocation4], 1 }
 0xd53   :  { %2461 = vsyncpa [#allocation11], 1 }
 0xd54   :  { %2462 = vsyncpa [#allocation5], 1 }

</bundles_post_ra>
